<compile_context>
chip_gen: v5e
topology: v5e:2x2
jax: 0.10.0
libtpu: 0.0.40
codegen_flags: <defaults>
</compile_context>

<pallas_src>
import functools

import jax
import jax.numpy as jnp
import numpy as np
from jax.experimental import pallas as pl
from jax.experimental.pallas import tpu as pltpu


def _fsmn_ffn_kernel(*refs, K, Tt, pad, T_true, H, eps, fold_conv1, cdtype):
    """One (batch, time-tile) grid step.

    refs (pad > 0):  xc, halo, w1, b1, gamma, beta, w2, out
    refs (pad == 0): xc,       w1, b1, gamma, beta, w2, out

    xc_ref  : (1, Tt, Cin_p)          center rows of x for this tile
    hal_ref : (1, 1, 4*pad, Cin_p)    [left(2*pad) ; right(2*pad)] halo rows
    w1_ref  : (K*Cin_p, H_p) if fold_conv1 else (K, Cin_p, H_p)
    b1/g/bt : (1, H_p) float32        (zero-padded in padded columns)
    w2_ref  : (K, H_p, Cout_p)
    o_ref   : (1, Tt, Cout_p)
    """
    if pad > 0:
        xc_ref, hal_ref, w1_ref, b1_ref, g_ref, bt_ref, w2_ref, o_ref = refs
    else:
        xc_ref, w1_ref, b1_ref, g_ref, bt_ref, w2_ref, o_ref = refs

    t = pl.program_id(1)
    Th = Tt + 2 * pad                       # hidden rows needed by this tile

    xc = xc_ref[0]                          # (Tt, Cin_p), compute dtype
    if pad > 0:
        hal = hal_ref[0, 0]                 # (4*pad, Cin_p)
        xw = jnp.concatenate([hal[0:2 * pad], xc, hal[2 * pad:4 * pad]], axis=0)
    else:
        xw = xc                             # (Tt + 4*pad, Cin_p)

    # ---- conv1 (+bias, ReLU): MXU matmuls with f32 accumulation --------------
    if fold_conv1:
        # im2col: one (Th, K*Cin_p) x (K*Cin_p, H_p) dot fills the 256-deep MXU.
        lhs = jnp.concatenate([xw[k:k + Th] for k in range(K)], axis=1)
        h = jnp.dot(lhs, w1_ref[...], preferred_element_type=jnp.float32)
    else:
        h = jnp.dot(xw[0:Th], w1_ref[0], preferred_element_type=jnp.float32)
        for k in range(1, K):               # K is small & static
            h = h + jnp.dot(xw[k:k + Th], w1_ref[k],
                            preferred_element_type=jnp.float32)
    h = jnp.maximum(h + b1_ref[...], 0.0)   # (Th, H_p) f32

    # ---- LayerNorm over the *true* hidden channels ---------------------------
    # Padded hidden columns of h are exactly zero (zero-padded w1/b1 + ReLU) but
    # must not contribute to the variance; mask only when padding exists.
    H_p = h.shape[1]
    inv_h = jnp.float32(1.0 / H)
    mean = jnp.sum(h, axis=-1, keepdims=True) * inv_h
    c = h - mean
    if H != H_p:
        col_ok = jax.lax.broadcasted_iota(jnp.int32, (1, H_p), 1) < H
        c = jnp.where(col_ok, c, 0.0)
    var = jnp.sum(c * c, axis=-1, keepdims=True) * inv_h
    hn = c * jax.lax.rsqrt(var + eps) * g_ref[...] + bt_ref[...]

    # ---- conv2 zero-padding: rows outside [0, T_true) are zeros --------------
    # Applied as a cheap (Th, 1) f32 multiply (keep this BEFORE conv2).
    if pad > 0:
        row = jax.lax.broadcasted_iota(jnp.int32, (Th, 1), 0)
        g_pos = t * Tt + row - pad          # global time index of each hn row
        row_ok = ((g_pos >= 0) & (g_pos < T_true)).astype(jnp.float32)
        hn = hn * row_ok
    hn = hn.astype(cdtype)                  # MXU native dtype

    # ---- conv2: K taps, no bias ----------------------------------------------
    y = jnp.dot(hn[0:Tt], w2_ref[0], preferred_element_type=jnp.float32)
    for k in range(1, K):
        y = y + jnp.dot(hn[k:k + Tt], w2_ref[k],
                        preferred_element_type=jnp.float32)
    o_ref[0] = y.astype(o_ref.dtype)


def _round_up(n, m):
    return ((n + m - 1) // m) * m


def _vmem_capacity_bytes():
    """Best-effort per-core VMEM capacity; conservative (v7x) fallback."""
    try:
        info = pltpu.get_tpu_info()
        for attr in ("vmem_capacity_bytes", "vmem_bytes"):
            v = getattr(info, attr, None)
            if v:
                return int(v)
    except Exception:
        pass
    return 64 * 1024 * 1024


def fsmn_feed_forward(x, w1, b1, gamma, beta, w2, kernel_size, ilens=None, *,
                      tile_t=None, compute_dtype=jnp.bfloat16):
    """x: (B, T, in_chans) -> (y: (B, T, out_chans), ilens).

    compute_dtype: storage dtype for x / conv weights fed to the MXU (f32
    accumulation is always used).  Default bf16 (v6e/v7x MXU peak); pass
    jnp.float32 for bit-closer f32 results.
    """
    B, T, Cin = x.shape
    K = int(kernel_size)
    assert K % 2 == 1, "output length matches input only for odd kernel_size"
    pad = (K - 1) // 2
    H = w1.shape[2]
    Cout = w2.shape[2]
    eps = 1e-5
    out_dtype = x.dtype
    cdtype = jnp.dtype(compute_dtype) if compute_dtype is not None else jnp.dtype(x.dtype)

    LANE = 128
    Cin_p = _round_up(Cin, LANE)
    H_p = _round_up(H, LANE)
    Cout_p = _round_up(Cout, LANE)

    # ---- time tiling ----------------------------------------------------------
    vmem_cap = _vmem_capacity_bytes()
    if tile_t is None:
        # 128 MiB parts (v5e/v6e): big tiles amortize per-step overhead; 64 MiB
        # (v7x): stay smaller so per-TC weights + f32 temporaries fit.
        tile_t = 512 if vmem_cap >= (100 << 20) else 256
    Tt = _round_up(min(tile_t, _round_up(T, 8)), 8)
    n_t = (T + Tt - 1) // Tt
    if B * n_t < 2 and T > 8:       # v7x dual-TC occupancy: keep >= 2 grid steps
        Tt = _round_up((T + 1) // 2, 8)
        n_t = (T + Tt - 1) // Tt
    T_round = n_t * Tt
    Th = Tt + 2 * pad

    fold_conv1 = (K > 1) and (Cin_p <= 128)

    csize = jnp.dtype(cdtype).itemsize
    osize = jnp.dtype(out_dtype).itemsize

    # ---- parameters (zero-padded to lane multiples; weights in compute dtype) -
    w1_c = w1.astype(cdtype)
    w2_c = w2.astype(cdtype)
    if (Cin_p, H_p) != (Cin, H):
        w1_c = jnp.pad(w1_c, ((0, 0), (0, Cin_p - Cin), (0, H_p - H)))
    if (H_p, Cout_p) != (H, Cout):
        w2_c = jnp.pad(w2_c, ((0, 0), (0, H_p - H), (0, Cout_p - Cout)))
    w1_arg = w1_c.reshape(K * Cin_p, H_p) if fold_conv1 else w1_c

    def _vec(p):
        p = p.astype(jnp.float32)
        if H_p != H:
            p = jnp.pad(p, (0, H_p - H))
        return p.reshape(1, H_p)

    b1_p, g_p, bt_p = _vec(b1), _vec(gamma), _vec(beta)

    # ---- input: center blocks come straight from x (no halo-window gather);
    # only the 4*pad halo rows per tile are gathered on the side (tiny).
    x_c = x.astype(cdtype)
    if T_round != T or Cin_p != Cin:
        x_c = jnp.pad(x_c, ((0, 0), (0, T_round - T), (0, Cin_p - Cin)))
    args = [x_c]
    if pad > 0:
        starts = jnp.arange(n_t) * Tt
        off = jnp.arange(2 * pad)
        idx = jnp.concatenate(
            [starts[:, None] - 2 * pad + off[None, :],     # left halo rows
             starts[:, None] + Tt + off[None, :]], axis=1)  # right halo rows
        valid = ((idx >= 0) & (idx < T)).astype(cdtype)
        halo = x_c[:, jnp.clip(idx, 0, T_round - 1), :] * valid[None, :, :, None]
        args.append(halo)                                   # (B, n_t, 4*pad, Cin_p)
    args += [w1_arg, b1_p, g_p, bt_p, w2_c]

    kernel = functools.partial(
        _fsmn_ffn_kernel, K=K, Tt=Tt, pad=pad, T_true=T, H=H, eps=eps,
        fold_conv1=fold_conv1, cdtype=cdtype)

    # ---- cost estimate + VMEM budget derived from the actual footprint -------
    flops = 2 * B * n_t * K * (Th * Cin_p * H_p + Tt * H_p * Cout_p)
    bytes_accessed = int(sum(int(a.size) * a.dtype.itemsize for a in args)
                         + B * T_round * Cout_p * osize)
    cost = pl.CostEstimate(flops=int(flops), transcendentals=int(B * n_t * Th),
                           bytes_accessed=bytes_accessed)

    need = (2 * Tt * Cin_p * csize                              # x center, 2 bufs
            + 2 * (4 * pad + 8) * Cin_p * csize                 # halos
            + 2 * (K * Cin_p * H_p + K * H_p * Cout_p) * csize  # weights (worst case)
            + 2 * Tt * Cout_p * osize                           # output tiles
            + (Tt + 4 * pad + 8) * Cin_p * csize                # assembled window
            + (Th * K * Cin_p * csize if fold_conv1 else 0)     # im2col LHS
            + 4 * Th * H_p * 4                                  # f32 h / c / hn temps
            + Tt * Cout_p * 4                                   # f32 conv2 accumulator
            + 6 * H_p * 4)                                      # bias / gamma / beta
    cap = max(32 << 20, int(0.75 * vmem_cap))                   # leave compiler headroom
    vmem_limit = int(min(cap, max(32 << 20, int(need * 1.4) + (4 << 20))))

    def _in_specs(single_buffer_weights):
        def wspec(shape, index_map):
            # Constant-index-map params: one buffer is enough (fetched once).
            if single_buffer_weights:
                return pl.BlockSpec(shape, index_map, pipeline_mode=pl.Buffered(1))
            return pl.BlockSpec(shape, index_map)

        c2 = lambda b, t: (0, 0)
        c3 = lambda b, t: (0, 0, 0)
        specs = [pl.BlockSpec((1, Tt, Cin_p), lambda b, t: (b, t, 0))]  # x center
        # (On v5e mem-bound configs, pipeline_mode=pl.Buffered(3) here deepens
        #  the x prefetch; default double-buffering is kept for VMEM economy.)
        if pad > 0:
            specs.append(pl.BlockSpec((1, 1, 4 * pad, Cin_p),
                                      lambda b, t: (b, t, 0, 0)))       # halo
        specs += [
            wspec((K * Cin_p, H_p), c2) if fold_conv1 else wspec((K, Cin_p, H_p), c3),
            wspec((1, H_p), c2),        # b1
            wspec((1, H_p), c2),        # gamma
            wspec((1, H_p), c2),        # beta
            wspec((K, H_p, Cout_p), c3),
        ]
        return specs

    def _run(single_buffer_weights):
        return pl.pallas_call(
            kernel,
            out_shape=jax.ShapeDtypeStruct((B, T_round, Cout_p), out_dtype),
            grid_spec=pltpu.PrefetchScalarGridSpec(
                num_scalar_prefetch=0,
                grid=(B, n_t),
                in_specs=_in_specs(single_buffer_weights),
                out_specs=pl.BlockSpec((1, Tt, Cout_p), lambda b, t: (b, t, 0)),
            ),
            compiler_params=pltpu.CompilerParams(
                dimension_semantics=("parallel", "parallel"),
                vmem_limit_bytes=vmem_limit),
            cost_estimate=cost,
        )(*args)

    if hasattr(pl, "Buffered"):
        try:
            y_p = _run(True)
        except Exception:
            # Older Pallas without BlockSpec.pipeline_mode / Buffered(1) support.
            y_p = _run(False)
    else:
        y_p = _run(False)

    # Strip T rounding / channel padding only when it is not a no-op.
    if T_round != T or Cout_p != Cout:
        y_p = y_p[:, :T, :Cout]
    return y_p, ilens


def _reference(x, w1, b1, gamma, beta, w2, K, eps=1e-5):
    """Pure-JAX f32 reference matching the torch module (eval mode)."""
    pad = (K - 1) // 2

    def conv1d(inp, w, b=None):                 # inp (B,T,Ci), w (K,Ci,Co)
        T = inp.shape[1]
        xp = jnp.pad(inp, ((0, 0), (pad, pad), (0, 0)))
        out = jnp.zeros((inp.shape[0], T, w.shape[2]), jnp.float32)
        for k in range(K):
            out = out + jnp.einsum("btc,cd->btd", xp[:, k:k + T, :], w[k])
        if b is not None:
            out = out + b
        return out

    h = jax.nn.relu(conv1d(x, w1, b1))
    # dropout is identity in eval mode
    mean = jnp.mean(h, axis=-1, keepdims=True)
    var = jnp.mean(jnp.square(h - mean), axis=-1, keepdims=True)
    hn = (h - mean) / jnp.sqrt(var + eps) * gamma + beta
    return conv1d(hn, w2)                       # w_2 has bias=False


if __name__ == "__main__":
    # Small shapes consistent with the module's forward: x is (B, T, in_chans).
    B, T, Cin, H, Cout, K = 2, 16, 4, 32, 4, 3
    key = jax.random.PRNGKey(0)
    kx, k1, kb1, kg, kb, k2 = jax.random.split(key, 6)

    x = jax.random.normal(kx, (B, T, Cin), dtype=jnp.float32)

    # Deterministic synthetic parameters (Conv1d-like uniform fan-in init).
    bound1 = 1.0 / np.sqrt(Cin * K)
    w1 = jax.random.uniform(k1, (K, Cin, H), jnp.float32, -bound1, bound1)
    b1 = jax.random.uniform(kb1, (H,), jnp.float32, -bound1, bound1)
    gamma = 1.0 + 0.1 * jax.random.normal(kg, (H,), jnp.float32)
    beta = 0.1 * jax.random.normal(kb, (H,), jnp.float32)
    bound2 = 1.0 / np.sqrt(H * K)
    w2 = jax.random.uniform(k2, (K, H, Cout), jnp.float32, -bound2, bound2)

    ref = np.asarray(_reference(x, w1, b1, gamma, beta, w2, K))

    # f32 compute path (exact check), single time tile.
    out_f32, _ = fsmn_feed_forward(x, w1, b1, gamma, beta, w2, K,
                                   compute_dtype=jnp.float32)
    out_f32 = jax.block_until_ready(out_f32)
    np.testing.assert_allclose(np.asarray(out_f32), ref, rtol=1e-4, atol=1e-4)

    # Multi time-tile f32 path (exercises halo stitching + boundary row masking).
    out_tiled, _ = fsmn_feed_forward(x, w1, b1, gamma, beta, w2, K, tile_t=8,
                                     compute_dtype=jnp.float32)
    out_tiled = jax.block_until_ready(out_tiled)
    np.testing.assert_allclose(np.asarray(out_tiled), ref, rtol=1e-4, atol=1e-4)

    # Default bf16-storage path (f32 accumulation); looser tolerance vs f32 ref.
    out_bf16, _ = fsmn_feed_forward(x, w1, b1, gamma, beta, w2, K)
    out_bf16 = jax.block_until_ready(out_bf16)
    np.testing.assert_allclose(np.asarray(out_bf16), ref, rtol=1e-1, atol=1e-1)

    print("KERNEL_OK")
</pallas_src>

<mosaic_0001>
module attributes {stable_mosaic.version = 11 : i64} {
  func.func @_fsmn_ffn_kernel(%arg0: i32, %arg1: i32, %arg2: memref<1x16x128xf32, #tpu.memory_space<vmem>>, %arg3: memref<1x1x4x128xf32, #tpu.memory_space<vmem>>, %arg4: memref<384x128xf32, #tpu.memory_space<vmem>>, %arg5: memref<1x128xf32, #tpu.memory_space<vmem>>, %arg6: memref<1x128xf32, #tpu.memory_space<vmem>>, %arg7: memref<1x128xf32, #tpu.memory_space<vmem>>, %arg8: memref<3x128x128xf32, #tpu.memory_space<vmem>>, %arg9: memref<1x16x128xf32, #tpu.memory_space<vmem>>) attributes {dimension_semantics = [#tpu.dimension_semantics<parallel>, #tpu.dimension_semantics<parallel>], iteration_bounds = array<i64: 2, 1>, scalar_prefetch = 0 : i64, scratch_operands = 0 : i64, tpu.core_type = #tpu.core_type<tc>, window_params = [{transform_indices = @transform_0, window_bounds = array<i64: 1, 16, 128>}, {transform_indices = @transform_1, window_bounds = array<i64: 1, 1, 4, 128>}, {pipeline_mode = #tpu.pipeline_mode<synchronous>, transform_indices = @transform_2, window_bounds = array<i64: 384, 128>}, {pipeline_mode = #tpu.pipeline_mode<synchronous>, transform_indices = @transform_3, window_bounds = array<i64: 1, 128>}, {pipeline_mode = #tpu.pipeline_mode<synchronous>, transform_indices = @transform_4, window_bounds = array<i64: 1, 128>}, {pipeline_mode = #tpu.pipeline_mode<synchronous>, transform_indices = @transform_5, window_bounds = array<i64: 1, 128>}, {pipeline_mode = #tpu.pipeline_mode<synchronous>, transform_indices = @transform_6, window_bounds = array<i64: 3, 128, 128>}, {transform_indices = @transform_7, window_bounds = array<i64: 1, 16, 128>}]} {
    %c0 = arith.constant 0 : index
    %c0_0 = arith.constant 0 : index
    %c0_1 = arith.constant 0 : index
    %0 = vector.load %arg2[%c0, %c0_0, %c0_1] : memref<1x16x128xf32, #tpu.memory_space<vmem>>, vector<1x16x128xf32>
    %1 = vector.shape_cast %0 : vector<1x16x128xf32> to vector<16x128xf32>
    %c0_2 = arith.constant 0 : index
    %c0_3 = arith.constant 0 : index
    %c0_4 = arith.constant 0 : index
    %c0_5 = arith.constant 0 : index
    %2 = vector.load %arg3[%c0_2, %c0_3, %c0_4, %c0_5] : memref<1x1x4x128xf32, #tpu.memory_space<vmem>>, vector<1x1x4x128xf32>
    %3 = vector.shape_cast %2 : vector<1x1x4x128xf32> to vector<4x128xf32>
    %4 = vector.extract_strided_slice %3 {offsets = [0, 0], sizes = [2, 128], strides = [1, 1]} : vector<4x128xf32> to vector<2x128xf32>
    %5 = vector.extract_strided_slice %3 {offsets = [2, 0], sizes = [2, 128], strides = [1, 1]} : vector<4x128xf32> to vector<2x128xf32>
    %6 = tpu.concatenate %4, %1, %5 in 0 : vector<2x128xf32>, vector<16x128xf32>, vector<2x128xf32> -> vector<20x128xf32>
    %7 = vector.extract_strided_slice %6 {offsets = [0, 0], sizes = [18, 128], strides = [1, 1]} : vector<20x128xf32> to vector<18x128xf32>
    %8 = vector.extract_strided_slice %6 {offsets = [1, 0], sizes = [18, 128], strides = [1, 1]} : vector<20x128xf32> to vector<18x128xf32>
    %9 = vector.extract_strided_slice %6 {offsets = [2, 0], sizes = [18, 128], strides = [1, 1]} : vector<20x128xf32> to vector<18x128xf32>
    %10 = tpu.concatenate %7, %8, %9 in 1 : vector<18x128xf32>, vector<18x128xf32>, vector<18x128xf32> -> vector<18x384xf32>
    %c0_6 = arith.constant 0 : index
    %c0_7 = arith.constant 0 : index
    %11 = vector.load %arg4[%c0_6, %c0_7] : memref<384x128xf32, #tpu.memory_space<vmem>>, vector<384x128xf32>
    %cst = arith.constant dense<0.000000e+00> : vector<18x128xf32>
    %12 = tpu.matmul %10, %11, %cst {dimension_numbers = #tpu.dot_dimension_numbers<[1], [0], [0], [1], [0, 0, 1, 1], [], []>} : vector<18x384xf32>, vector<384x128xf32>, vector<18x128xf32> -> vector<18x128xf32>
    %c0_8 = arith.constant 0 : index
    %c0_9 = arith.constant 0 : index
    %13 = vector.load %arg5[%c0_8, %c0_9] : memref<1x128xf32, #tpu.memory_space<vmem>>, vector<1x128xf32>
    %14 = vector.broadcast %13 : vector<1x128xf32> to vector<18x128xf32>
    %15 = arith.addf %12, %14 : vector<18x128xf32>
    %cst_10 = arith.constant 0.000000e+00 : f32
    %16 = vector.broadcast %cst_10 : f32 to vector<18x128xf32>
    %17 = arith.maximumf %15, %16 : vector<18x128xf32>
    %cst_11 = arith.constant dense<0.000000e+00> : vector<18xf32>
    %18 = vector.multi_reduction <add>, %17, %cst_11 [1] : vector<18x128xf32> to vector<18xf32>
    %19 = vector.shape_cast %18 : vector<18xf32> to vector<18x1xf32>
    %cst_12 = arith.constant 3.125000e-02 : f32
    %20 = vector.broadcast %cst_12 : f32 to vector<18x1xf32>
    %21 = arith.mulf %19, %20 : vector<18x1xf32>
    %22 = vector.broadcast %21 : vector<18x1xf32> to vector<18x128xf32>
    %23 = arith.subf %17, %22 : vector<18x128xf32>
    %24 = tpu.iota {dimensions = array<i32: 1>} : vector<1x128xi32>
    %c32_i32 = arith.constant 32 : i32
    %25 = vector.broadcast %c32_i32 : i32 to vector<1x128xi32>
    %26 = arith.cmpi slt, %24, %25 : vector<1x128xi32>
    %cst_13 = arith.constant 0.000000e+00 : f32
    %27 = vector.shape_cast %26 : vector<1x128xi1> to vector<1x128xi1>
    %28 = vector.broadcast %27 : vector<1x128xi1> to vector<18x128xi1>
    %29 = vector.broadcast %cst_13 : f32 to vector<18x128xf32>
    %30 = arith.select %28, %23, %29 : vector<18x128xi1>, vector<18x128xf32>
    %31 = arith.mulf %30, %30 : vector<18x128xf32>
    %cst_14 = arith.constant dense<0.000000e+00> : vector<18xf32>
    %32 = vector.multi_reduction <add>, %31, %cst_14 [1] : vector<18x128xf32> to vector<18xf32>
    %33 = vector.shape_cast %32 : vector<18xf32> to vector<18x1xf32>
    %cst_15 = arith.constant 3.125000e-02 : f32
    %34 = vector.broadcast %cst_15 : f32 to vector<18x1xf32>
    %35 = arith.mulf %33, %34 : vector<18x1xf32>
    %cst_16 = arith.constant 9.99999974E-6 : f32
    %36 = vector.broadcast %cst_16 : f32 to vector<18x1xf32>
    %37 = arith.addf %35, %36 : vector<18x1xf32>
    %38 = math.rsqrt %37 : vector<18x1xf32>
    %39 = vector.broadcast %38 : vector<18x1xf32> to vector<18x128xf32>
    %40 = arith.mulf %30, %39 : vector<18x128xf32>
    %c0_17 = arith.constant 0 : index
    %c0_18 = arith.constant 0 : index
    %41 = vector.load %arg6[%c0_17, %c0_18] : memref<1x128xf32, #tpu.memory_space<vmem>>, vector<1x128xf32>
    %42 = vector.broadcast %41 : vector<1x128xf32> to vector<18x128xf32>
    %43 = arith.mulf %40, %42 : vector<18x128xf32>
    %c0_19 = arith.constant 0 : index
    %c0_20 = arith.constant 0 : index
    %44 = vector.load %arg7[%c0_19, %c0_20] : memref<1x128xf32, #tpu.memory_space<vmem>>, vector<1x128xf32>
    %45 = vector.broadcast %44 : vector<1x128xf32> to vector<18x128xf32>
    %46 = arith.addf %43, %45 : vector<18x128xf32>
    %47 = tpu.iota {dimensions = array<i32: 0>} : vector<18x1xi32>
    %c16_i32 = arith.constant 16 : i32
    %48 = arith.muli %arg1, %c16_i32 : i32
    %49 = vector.broadcast %48 : i32 to vector<18x1xi32>
    %50 = arith.addi %49, %47 : vector<18x1xi32>
    %c1_i32 = arith.constant 1 : i32
    %51 = vector.broadcast %c1_i32 : i32 to vector<18x1xi32>
    %52 = arith.subi %50, %51 : vector<18x1xi32>
    %c0_i32 = arith.constant 0 : i32
    %53 = vector.broadcast %c0_i32 : i32 to vector<18x1xi32>
    %54 = arith.cmpi sge, %52, %53 : vector<18x1xi32>
    %c16_i32_21 = arith.constant 16 : i32
    %55 = vector.broadcast %c16_i32_21 : i32 to vector<18x1xi32>
    %56 = arith.cmpi slt, %52, %55 : vector<18x1xi32>
    %57 = arith.andi %54, %56 : vector<18x1xi1>
    %58 = arith.extui %57 : vector<18x1xi1> to vector<18x1xi32>
    %59 = arith.sitofp %58 : vector<18x1xi32> to vector<18x1xf32>
    %60 = vector.broadcast %59 : vector<18x1xf32> to vector<18x128xf32>
    %61 = arith.mulf %46, %60 : vector<18x128xf32>
    %62 = vector.extract_strided_slice %61 {offsets = [0, 0], sizes = [16, 128], strides = [1, 1]} : vector<18x128xf32> to vector<16x128xf32>
    %c0_22 = arith.constant 0 : index
    %c0_23 = arith.constant 0 : index
    %c0_24 = arith.constant 0 : index
    %63 = vector.load %arg8[%c0_22, %c0_23, %c0_24] : memref<3x128x128xf32, #tpu.memory_space<vmem>>, vector<1x128x128xf32>
    %64 = vector.shape_cast %63 : vector<1x128x128xf32> to vector<128x128xf32>
    %cst_25 = arith.constant dense<0.000000e+00> : vector<16x128xf32>
    %65 = tpu.matmul %62, %64, %cst_25 {dimension_numbers = #tpu.dot_dimension_numbers<[1], [0], [0], [1], [0, 0, 1, 1], [], []>} : vector<16x128xf32>, vector<128x128xf32>, vector<16x128xf32> -> vector<16x128xf32>
    %66 = vector.extract_strided_slice %61 {offsets = [1, 0], sizes = [16, 128], strides = [1, 1]} : vector<18x128xf32> to vector<16x128xf32>
    %c1 = arith.constant 1 : index
    %c0_26 = arith.constant 0 : index
    %c0_27 = arith.constant 0 : index
    %67 = vector.load %arg8[%c1, %c0_26, %c0_27] : memref<3x128x128xf32, #tpu.memory_space<vmem>>, vector<1x128x128xf32>
    %68 = vector.shape_cast %67 : vector<1x128x128xf32> to vector<128x128xf32>
    %cst_28 = arith.constant dense<0.000000e+00> : vector<16x128xf32>
    %69 = tpu.matmul %66, %68, %cst_28 {dimension_numbers = #tpu.dot_dimension_numbers<[1], [0], [0], [1], [0, 0, 1, 1], [], []>} : vector<16x128xf32>, vector<128x128xf32>, vector<16x128xf32> -> vector<16x128xf32>
    %70 = arith.addf %65, %69 : vector<16x128xf32>
    %71 = vector.extract_strided_slice %61 {offsets = [2, 0], sizes = [16, 128], strides = [1, 1]} : vector<18x128xf32> to vector<16x128xf32>
    %c2 = arith.constant 2 : index
    %c0_29 = arith.constant 0 : index
    %c0_30 = arith.constant 0 : index
    %72 = vector.load %arg8[%c2, %c0_29, %c0_30] : memref<3x128x128xf32, #tpu.memory_space<vmem>>, vector<1x128x128xf32>
    %73 = vector.shape_cast %72 : vector<1x128x128xf32> to vector<128x128xf32>
    %cst_31 = arith.constant dense<0.000000e+00> : vector<16x128xf32>
    %74 = tpu.matmul %71, %73, %cst_31 {dimension_numbers = #tpu.dot_dimension_numbers<[1], [0], [0], [1], [0, 0, 1, 1], [], []>} : vector<16x128xf32>, vector<128x128xf32>, vector<16x128xf32> -> vector<16x128xf32>
    %75 = arith.addf %70, %74 : vector<16x128xf32>
    %c0_32 = arith.constant 0 : index
    %c0_33 = arith.constant 0 : index
    %c0_34 = arith.constant 0 : index
    %76 = vector.load %arg9[%c0_32, %c0_33, %c0_34] : memref<1x16x128xf32, #tpu.memory_space<vmem>>, vector<1x16x128xf32>
    %77 = vector.shape_cast %76 : vector<1x16x128xf32> to vector<16x128xf32>
    %78 = vector.shape_cast %75 : vector<16x128xf32> to vector<1x16x128xf32>
    tpu.vector_store %arg9[%c0_32, %c0_33, %c0_34], %78 {strides = array<i32>} : memref<1x16x128xf32, #tpu.memory_space<vmem>>, vector<1x16x128xf32>,
    return
  }
  func.func @transform_0(%arg0: i32, %arg1: i32) -> (i32, i32, i32) {
    %c0_i32 = arith.constant 0 : i32
    %c0_i32_0 = arith.constant 0 : i32
    return %arg0, %arg1, %c0_i32 : i32, i32, i32
  }
  func.func @transform_1(%arg0: i32, %arg1: i32) -> (i32, i32, i32, i32) {
    %c0_i32 = arith.constant 0 : i32
    %c0_i32_0 = arith.constant 0 : i32
    %c0_i32_1 = arith.constant 0 : i32
    return %arg0, %arg1, %c0_i32, %c0_i32_0 : i32, i32, i32, i32
  }
  func.func @transform_2(%arg0: i32, %arg1: i32) -> (i32, i32) {
    %c0_i32 = arith.constant 0 : i32
    %c0_i32_0 = arith.constant 0 : i32
    %c0_i32_1 = arith.constant 0 : i32
    return %c0_i32, %c0_i32_0 : i32, i32
  }
  func.func @transform_3(%arg0: i32, %arg1: i32) -> (i32, i32) {
    %c0_i32 = arith.constant 0 : i32
    %c0_i32_0 = arith.constant 0 : i32
    %c0_i32_1 = arith.constant 0 : i32
    return %c0_i32, %c0_i32_0 : i32, i32
  }
  func.func @transform_4(%arg0: i32, %arg1: i32) -> (i32, i32) {
    %c0_i32 = arith.constant 0 : i32
    %c0_i32_0 = arith.constant 0 : i32
    %c0_i32_1 = arith.constant 0 : i32
    return %c0_i32, %c0_i32_0 : i32, i32
  }
  func.func @transform_5(%arg0: i32, %arg1: i32) -> (i32, i32) {
    %c0_i32 = arith.constant 0 : i32
    %c0_i32_0 = arith.constant 0 : i32
    %c0_i32_1 = arith.constant 0 : i32
    return %c0_i32, %c0_i32_0 : i32, i32
  }
  func.func @transform_6(%arg0: i32, %arg1: i32) -> (i32, i32, i32) {
    %c0_i32 = arith.constant 0 : i32
    %c0_i32_0 = arith.constant 0 : i32
    %c0_i32_1 = arith.constant 0 : i32
    %c0_i32_2 = arith.constant 0 : i32
    return %c0_i32, %c0_i32_0, %c0_i32_1 : i32, i32, i32
  }
  func.func @transform_7(%arg0: i32, %arg1: i32) -> (i32, i32, i32) {
    %c0_i32 = arith.constant 0 : i32
    %c0_i32_0 = arith.constant 0 : i32
    return %arg0, %arg1, %c0_i32 : i32, i32, i32
  }
}

module attributes {stable_mosaic.version = 11 : i64} {
  func.func @_fsmn_ffn_kernel(%arg0: i32, %arg1: i32, %arg2: memref<1x16x128xf32, #tpu.memory_space<vmem>>, %arg3: memref<1x1x4x128xf32, #tpu.memory_space<vmem>>, %arg4: memref<384x128xf32, #tpu.memory_space<vmem>>, %arg5: memref<1x128xf32, #tpu.memory_space<vmem>>, %arg6: memref<1x128xf32, #tpu.memory_space<vmem>>, %arg7: memref<1x128xf32, #tpu.memory_space<vmem>>, %arg8: memref<3x128x128xf32, #tpu.memory_space<vmem>>, %arg9: memref<1x16x128xf32, #tpu.memory_space<vmem>>) attributes {dimension_semantics = [#tpu.dimension_semantics<parallel>, #tpu.dimension_semantics<parallel>], iteration_bounds = array<i64: 2, 1>, scalar_prefetch = 0 : i64, scratch_operands = 0 : i64, tpu.core_type = #tpu.core_type<tc>, window_params = [{transform_indices = @transform_0, window_bounds = array<i64: 1, 16, 128>}, {transform_indices = @transform_1, window_bounds = array<i64: 1, 1, 4, 128>}, {pipeline_mode = #tpu.pipeline_mode<synchronous>, transform_indices = @transform_2, window_bounds = array<i64: 384, 128>}, {pipeline_mode = #tpu.pipeline_mode<synchronous>, transform_indices = @transform_3, window_bounds = array<i64: 1, 128>}, {pipeline_mode = #tpu.pipeline_mode<synchronous>, transform_indices = @transform_4, window_bounds = array<i64: 1, 128>}, {pipeline_mode = #tpu.pipeline_mode<synchronous>, transform_indices = @transform_5, window_bounds = array<i64: 1, 128>}, {pipeline_mode = #tpu.pipeline_mode<synchronous>, transform_indices = @transform_6, window_bounds = array<i64: 3, 128, 128>}, {transform_indices = @transform_7, window_bounds = array<i64: 1, 16, 128>}]} {
    %c0 = arith.constant 0 : index
    %c0_0 = arith.constant 0 : index
    %c0_1 = arith.constant 0 : index
    %0 = vector.load %arg2[%c0, %c0_0, %c0_1] : memref<1x16x128xf32, #tpu.memory_space<vmem>>, vector<1x16x128xf32>
    %1 = vector.shape_cast %0 : vector<1x16x128xf32> to vector<16x128xf32>
    %c0_2 = arith.constant 0 : index
    %c0_3 = arith.constant 0 : index
    %c0_4 = arith.constant 0 : index
    %c0_5 = arith.constant 0 : index
    %2 = vector.load %arg3[%c0_2, %c0_3, %c0_4, %c0_5] : memref<1x1x4x128xf32, #tpu.memory_space<vmem>>, vector<1x1x4x128xf32>
    %3 = vector.shape_cast %2 : vector<1x1x4x128xf32> to vector<4x128xf32>
    %4 = vector.extract_strided_slice %3 {offsets = [0, 0], sizes = [2, 128], strides = [1, 1]} : vector<4x128xf32> to vector<2x128xf32>
    %5 = vector.extract_strided_slice %3 {offsets = [2, 0], sizes = [2, 128], strides = [1, 1]} : vector<4x128xf32> to vector<2x128xf32>
    %6 = tpu.concatenate %4, %1, %5 in 0 : vector<2x128xf32>, vector<16x128xf32>, vector<2x128xf32> -> vector<20x128xf32>
    %7 = vector.extract_strided_slice %6 {offsets = [0, 0], sizes = [18, 128], strides = [1, 1]} : vector<20x128xf32> to vector<18x128xf32>
    %8 = vector.extract_strided_slice %6 {offsets = [1, 0], sizes = [18, 128], strides = [1, 1]} : vector<20x128xf32> to vector<18x128xf32>
    %9 = vector.extract_strided_slice %6 {offsets = [2, 0], sizes = [18, 128], strides = [1, 1]} : vector<20x128xf32> to vector<18x128xf32>
    %10 = tpu.concatenate %7, %8, %9 in 1 : vector<18x128xf32>, vector<18x128xf32>, vector<18x128xf32> -> vector<18x384xf32>
    %c0_6 = arith.constant 0 : index
    %c0_7 = arith.constant 0 : index
    %11 = vector.load %arg4[%c0_6, %c0_7] : memref<384x128xf32, #tpu.memory_space<vmem>>, vector<384x128xf32>
    %cst = arith.constant dense<0.000000e+00> : vector<18x128xf32>
    %12 = tpu.matmul %10, %11, %cst {dimension_numbers = #tpu.dot_dimension_numbers<[1], [0], [0], [1], [0, 0, 1, 1], [], []>} : vector<18x384xf32>, vector<384x128xf32>, vector<18x128xf32> -> vector<18x128xf32>
    %c0_8 = arith.constant 0 : index
    %c0_9 = arith.constant 0 : index
    %13 = vector.load %arg5[%c0_8, %c0_9] : memref<1x128xf32, #tpu.memory_space<vmem>>, vector<1x128xf32>
    %14 = vector.broadcast %13 : vector<1x128xf32> to vector<18x128xf32>
    %15 = arith.addf %12, %14 : vector<18x128xf32>
    %cst_10 = arith.constant 0.000000e+00 : f32
    %16 = vector.broadcast %cst_10 : f32 to vector<18x128xf32>
    %17 = arith.maximumf %15, %16 : vector<18x128xf32>
    %cst_11 = arith.constant dense<0.000000e+00> : vector<18xf32>
    %18 = vector.multi_reduction <add>, %17, %cst_11 [1] : vector<18x128xf32> to vector<18xf32>
    %19 = vector.shape_cast %18 : vector<18xf32> to vector<18x1xf32>
    %cst_12 = arith.constant 3.125000e-02 : f32
    %20 = vector.broadcast %cst_12 : f32 to vector<18x1xf32>
    %21 = arith.mulf %19, %20 : vector<18x1xf32>
    %22 = vector.broadcast %21 : vector<18x1xf32> to vector<18x128xf32>
    %23 = arith.subf %17, %22 : vector<18x128xf32>
    %24 = tpu.iota {dimensions = array<i32: 1>} : vector<1x128xi32>
    %c32_i32 = arith.constant 32 : i32
    %25 = vector.broadcast %c32_i32 : i32 to vector<1x128xi32>
    %26 = arith.cmpi slt, %24, %25 : vector<1x128xi32>
    %cst_13 = arith.constant 0.000000e+00 : f32
    %27 = vector.shape_cast %26 : vector<1x128xi1> to vector<1x128xi1>
    %28 = vector.broadcast %27 : vector<1x128xi1> to vector<18x128xi1>
    %29 = vector.broadcast %cst_13 : f32 to vector<18x128xf32>
    %30 = arith.select %28, %23, %29 : vector<18x128xi1>, vector<18x128xf32>
    %31 = arith.mulf %30, %30 : vector<18x128xf32>
    %cst_14 = arith.constant dense<0.000000e+00> : vector<18xf32>
    %32 = vector.multi_reduction <add>, %31, %cst_14 [1] : vector<18x128xf32> to vector<18xf32>
    %33 = vector.shape_cast %32 : vector<18xf32> to vector<18x1xf32>
    %cst_15 = arith.constant 3.125000e-02 : f32
    %34 = vector.broadcast %cst_15 : f32 to vector<18x1xf32>
    %35 = arith.mulf %33, %34 : vector<18x1xf32>
    %cst_16 = arith.constant 9.99999974E-6 : f32
    %36 = vector.broadcast %cst_16 : f32 to vector<18x1xf32>
    %37 = arith.addf %35, %36 : vector<18x1xf32>
    %38 = math.rsqrt %37 : vector<18x1xf32>
    %39 = vector.broadcast %38 : vector<18x1xf32> to vector<18x128xf32>
    %40 = arith.mulf %30, %39 : vector<18x128xf32>
    %c0_17 = arith.constant 0 : index
    %c0_18 = arith.constant 0 : index
    %41 = vector.load %arg6[%c0_17, %c0_18] : memref<1x128xf32, #tpu.memory_space<vmem>>, vector<1x128xf32>
    %42 = vector.broadcast %41 : vector<1x128xf32> to vector<18x128xf32>
    %43 = arith.mulf %40, %42 : vector<18x128xf32>
    %c0_19 = arith.constant 0 : index
    %c0_20 = arith.constant 0 : index
    %44 = vector.load %arg7[%c0_19, %c0_20] : memref<1x128xf32, #tpu.memory_space<vmem>>, vector<1x128xf32>
    %45 = vector.broadcast %44 : vector<1x128xf32> to vector<18x128xf32>
    %46 = arith.addf %43, %45 : vector<18x128xf32>
    %47 = tpu.iota {dimensions = array<i32: 0>} : vector<18x1xi32>
    %c16_i32 = arith.constant 16 : i32
    %48 = arith.muli %arg1, %c16_i32 : i32
    %49 = vector.broadcast %48 : i32 to vector<18x1xi32>
    %50 = arith.addi %49, %47 : vector<18x1xi32>
    %c1_i32 = arith.constant 1 : i32
    %51 = vector.broadcast %c1_i32 : i32 to vector<18x1xi32>
    %52 = arith.subi %50, %51 : vector<18x1xi32>
    %c0_i32 = arith.constant 0 : i32
    %53 = vector.broadcast %c0_i32 : i32 to vector<18x1xi32>
    %54 = arith.cmpi sge, %52, %53 : vector<18x1xi32>
    %c16_i32_21 = arith.constant 16 : i32
    %55 = vector.broadcast %c16_i32_21 : i32 to vector<18x1xi32>
    %56 = arith.cmpi slt, %52, %55 : vector<18x1xi32>
    %57 = arith.andi %54, %56 : vector<18x1xi1>
    %58 = arith.extui %57 : vector<18x1xi1> to vector<18x1xi32>
    %59 = arith.sitofp %58 : vector<18x1xi32> to vector<18x1xf32>
    %60 = vector.broadcast %59 : vector<18x1xf32> to vector<18x128xf32>
    %61 = arith.mulf %46, %60 : vector<18x128xf32>
    %62 = vector.extract_strided_slice %61 {offsets = [0, 0], sizes = [16, 128], strides = [1, 1]} : vector<18x128xf32> to vector<16x128xf32>
    %c0_22 = arith.constant 0 : index
    %c0_23 = arith.constant 0 : index
    %c0_24 = arith.constant 0 : index
    %63 = vector.load %arg8[%c0_22, %c0_23, %c0_24] : memref<3x128x128xf32, #tpu.memory_space<vmem>>, vector<1x128x128xf32>
    %64 = vector.shape_cast %63 : vector<1x128x128xf32> to vector<128x128xf32>
    %cst_25 = arith.constant dense<0.000000e+00> : vector<16x128xf32>
    %65 = tpu.matmul %62, %64, %cst_25 {dimension_numbers = #tpu.dot_dimension_numbers<[1], [0], [0], [1], [0, 0, 1, 1], [], []>} : vector<16x128xf32>, vector<128x128xf32>, vector<16x128xf32> -> vector<16x128xf32>
    %66 = vector.extract_strided_slice %61 {offsets = [1, 0], sizes = [16, 128], strides = [1, 1]} : vector<18x128xf32> to vector<16x128xf32>
    %c1 = arith.constant 1 : index
    %c0_26 = arith.constant 0 : index
    %c0_27 = arith.constant 0 : index
    %67 = vector.load %arg8[%c1, %c0_26, %c0_27] : memref<3x128x128xf32, #tpu.memory_space<vmem>>, vector<1x128x128xf32>
    %68 = vector.shape_cast %67 : vector<1x128x128xf32> to vector<128x128xf32>
    %cst_28 = arith.constant dense<0.000000e+00> : vector<16x128xf32>
    %69 = tpu.matmul %66, %68, %cst_28 {dimension_numbers = #tpu.dot_dimension_numbers<[1], [0], [0], [1], [0, 0, 1, 1], [], []>} : vector<16x128xf32>, vector<128x128xf32>, vector<16x128xf32> -> vector<16x128xf32>
    %70 = arith.addf %65, %69 : vector<16x128xf32>
    %71 = vector.extract_strided_slice %61 {offsets = [2, 0], sizes = [16, 128], strides = [1, 1]} : vector<18x128xf32> to vector<16x128xf32>
    %c2 = arith.constant 2 : index
    %c0_29 = arith.constant 0 : index
    %c0_30 = arith.constant 0 : index
    %72 = vector.load %arg8[%c2, %c0_29, %c0_30] : memref<3x128x128xf32, #tpu.memory_space<vmem>>, vector<1x128x128xf32>
    %73 = vector.shape_cast %72 : vector<1x128x128xf32> to vector<128x128xf32>
    %cst_31 = arith.constant dense<0.000000e+00> : vector<16x128xf32>
    %74 = tpu.matmul %71, %73, %cst_31 {dimension_numbers = #tpu.dot_dimension_numbers<[1], [0], [0], [1], [0, 0, 1, 1], [], []>} : vector<16x128xf32>, vector<128x128xf32>, vector<16x128xf32> -> vector<16x128xf32>
    %75 = arith.addf %70, %74 : vector<16x128xf32>
    %c0_32 = arith.constant 0 : index
    %c0_33 = arith.constant 0 : index
    %c0_34 = arith.constant 0 : index
    %76 = vector.load %arg9[%c0_32, %c0_33, %c0_34] : memref<1x16x128xf32, #tpu.memory_space<vmem>>, vector<1x16x128xf32>
    %77 = vector.shape_cast %76 : vector<1x16x128xf32> to vector<16x128xf32>
    %78 = vector.shape_cast %75 : vector<16x128xf32> to vector<1x16x128xf32>
    tpu.vector_store %arg9[%c0_32, %c0_33, %c0_34], %78 {strides = array<i32>} : memref<1x16x128xf32, #tpu.memory_space<vmem>>, vector<1x16x128xf32>,
    return
  }
  func.func @transform_0(%arg0: i32, %arg1: i32) -> (i32, i32, i32) {
    %c0_i32 = arith.constant 0 : i32
    %c0_i32_0 = arith.constant 0 : i32
    return %arg0, %arg1, %c0_i32 : i32, i32, i32
  }
  func.func @transform_1(%arg0: i32, %arg1: i32) -> (i32, i32, i32, i32) {
    %c0_i32 = arith.constant 0 : i32
    %c0_i32_0 = arith.constant 0 : i32
    %c0_i32_1 = arith.constant 0 : i32
    return %arg0, %arg1, %c0_i32, %c0_i32_0 : i32, i32, i32, i32
  }
  func.func @transform_2(%arg0: i32, %arg1: i32) -> (i32, i32) {
    %c0_i32 = arith.constant 0 : i32
    %c0_i32_0 = arith.constant 0 : i32
    %c0_i32_1 = arith.constant 0 : i32
    return %c0_i32, %c0_i32_0 : i32, i32
  }
  func.func @transform_3(%arg0: i32, %arg1: i32) -> (i32, i32) {
    %c0_i32 = arith.constant 0 : i32
    %c0_i32_0 = arith.constant 0 : i32
    %c0_i32_1 = arith.constant 0 : i32
    return %c0_i32, %c0_i32_0 : i32, i32
  }
  func.func @transform_4(%arg0: i32, %arg1: i32) -> (i32, i32) {
    %c0_i32 = arith.constant 0 : i32
    %c0_i32_0 = arith.constant 0 : i32
    %c0_i32_1 = arith.constant 0 : i32
    return %c0_i32, %c0_i32_0 : i32, i32
  }
  func.func @transform_5(%arg0: i32, %arg1: i32) -> (i32, i32) {
    %c0_i32 = arith.constant 0 : i32
    %c0_i32_0 = arith.constant 0 : i32
    %c0_i32_1 = arith.constant 0 : i32
    return %c0_i32, %c0_i32_0 : i32, i32
  }
  func.func @transform_6(%arg0: i32, %arg1: i32) -> (i32, i32, i32) {
    %c0_i32 = arith.constant 0 : i32
    %c0_i32_0 = arith.constant 0 : i32
    %c0_i32_1 = arith.constant 0 : i32
    %c0_i32_2 = arith.constant 0 : i32
    return %c0_i32, %c0_i32_0, %c0_i32_1 : i32, i32, i32
  }
  func.func @transform_7(%arg0: i32, %arg1: i32) -> (i32, i32, i32) {
    %c0_i32 = arith.constant 0 : i32
    %c0_i32_0 = arith.constant 0 : i32
    return %arg0, %arg1, %c0_i32 : i32, i32, i32
  }
}

</mosaic_0001>

<bundles_post_ra>
// kernel: tpu_custom_call.1
= control target key start
LH: loop header
LB: loop body
LE: loop exit
PB: predicated region body
PF: predicated region fallthrough
CT: control target
= control target key end

     0   :  { %s1677_s0 = inlined_call_operand.hbm [shape: f32[2,16,128], index: 0, kind: input, shape index: {}]   ;;  %s1678_s1 = inlined_call_operand.hbm [shape: f32[2,1,4,128], index: 1, kind: input, shape index: {}]   ;;  %s1679_s2 = inlined_call_operand.hbm [shape: f32[384,128], index: 2, kind: input, shape index: {}]   ;;  %s1680_s3 = inlined_call_operand.vmem [shape: f32[1,128], index: 3, kind: input, shape index: {}]   ;;  %s1681_s4 = inlined_call_operand.vmem [shape: f32[1,128], index: 4, kind: input, shape index: {}]   ;;  %s1682_s5 = inlined_call_operand.vmem [shape: f32[1,128], index: 5, kind: input, shape index: {}]   ;;  %s1683_s6 = inlined_call_operand.hbm [shape: f32[3,128,128], index: 6, kind: input, shape index: {}]   ;;  %s1684_s7 = inlined_call_operand.hbm [shape: f32[2,16,128], index: 7, kind: output, shape index: {}]  }
   0x1   :  { %1693 = sst [smem:[#allocation22_spill]] %s1679_s2 }
   0x2   :  { %1694 = sst [smem:[#allocation23_spill]] %s1683_s6 }
   0x3   :  { %12 = vsyncpa [#allocation3], 0 }
   0x4   :  { %14 = vsyncpa [#allocation3 + $0x1], 0 }
   0x5   :  { %15 = vsyncpa [#allocation6], 0 }
   0x6   :  { %17 = vsyncpa [#allocation6 + $0x1], 0 }
   0x7   :  { %18 = vsyncpa [#allocation9], 0 }
   0x8   :  { %19 = vsyncpa [#allocation4], 0 }
   0x9   :  { %21 = vsyncpa [#allocation4 + $0x1], 0  ;;  %s1389_s24 = smov 0   ;;  %s1391_s25 = smov 0  }
   0xa   :  { %s1393_s26 = smov 0   ;;  %s1395_s27 = smov 0  }
   0xb   :  { %s1397_s28 = smov 0   ;;  %s1399_s29 = smov 0  }
   0xc LB: > { %1695 = sst [smem:[#allocation16_spill]] %s1320_s24  ;;  %s1420_s30 = sadd.s32 4294967295, %s1340_s29   ;;  %s1340_s29 = sphi %s1399_s29, %s27_s29   ;;  %s1336_s28 = sphi %s1397_s28, %s1719_s28   ;;  %s1332_s27 = sphi %s1395_s27, %s1718_s27   ;;  %s1328_s26 = sphi %s1393_s26, %s1714_s26   ;;  %s1324_s25 = sphi %s1391_s25, %s1717_s25   ;;  %s1320_s24 = sphi %s1389_s24, %s1716_s24  }
   0xd   : > { %1696 = sst [smem:[#allocation17_spill]] %s1328_s26  ;;  %s964_s8 = sadd.s32 4294967294, %s1340_s29  }
   0xe   : > { %p61_p0 = scmp.ne.s32.totalorder %s1324_s25, %s1320_s24  ;;  %p62_p1 = scmp.eq.s32.totalorder %s1420_s30, 0 }
   0xf   : > { %p220_p2 = scmp.eq.s32.totalorder %s1420_s30, 1  ;;  %p226_p3 = scmp.eq.s32.totalorder %s964_s8, 1 }
  0x10   : > { %p1429_p4 = por %p62_p1, %p61_p0  ;;  %p965_p5 = scmp.ge.s32.totalorder %s1340_s29, 1 }
  0x11   : > { %p1434_p6 = por %p226_p3, %p61_p0  ;;  %p233_p7 = scmp.lt.s32.totalorder %s1340_s29, 3 }
  0x12   : > { %s1700_s2 = sld [smem:[#allocation22_spill]]  ;;  %s1342_s15 = smov [#allocation7]  }
  0x13   : > { %s1698_s10 = scalar_select %p1434_p6, 1, 0 }
  0x14   : > { %p1442_p8 = pnand %p965_p5, %p233_p7  ;;  %s246_s16 = sshll.u32 %s1342_s15, 4  ;;  %s247_s16 = int_to_ptr.vmem [resolvable:$true] %s246_s16 }
  0x15   : > { %1699 = sst [smem:[#allocation18_spill]] %s1698_s10  ;;  %p968_p11 = scmp.ge.s32.totalorder %s1340_s29, 2 }
  0x16   : > { %p1038_p9 = pneg %p1442_p8  ;;  %s1702_s6 = sld [smem:[#allocation23_spill]] }
  0x17   : > { %s1685_s20 = smov 128   ;;  %s1686_s21 = smov 8  }
  0x18   : > { %s244_s13 = sshll.u32 %s1700_s2, 4  ;;  %p1039_p10 = pnand %p1038_p9, %p62_p1  ;;  %s245_s13 = int_to_ptr.hbm [resolvable:$true] %s244_s13 }
  0x19   : > { %s1345_s22 = smov [#allocation8]   ;;  %s39_s8 = sadd.s32 1, %s1336_s28 }
  0x1a   : > { %1041 = dma.hbm_to_vmem [thread:$0]  (!%p1039_p10), %s245_s13, 6144, %s247_s16, [#allocation6], %s1685_s20, %s1685_s20, %s1686_s21  }
  0x1b   : > { %s269_s23 = sshll.u32 %s1345_s22, 4  ;;  %s48_s11 = sadd.s32 1, %s1328_s26  ;;  %s270_s23 = int_to_ptr.vmem [resolvable:$true] %s269_s23 }
  0x1c   : > { %s267_s19 = sshll.u32 %s1702_s6, 4  ;;  %p41_p12 = scmp.ge.s32.totalorder %s39_s8, 2  ;;  %s268_s19 = int_to_ptr.hbm [resolvable:$true] %s267_s19 }
  0x1d   : > { %1044 = dma.hbm_to_vmem [thread:$0]  (!%p1039_p10), %s268_s19, 6144, %s270_s23, [#allocation9], %s1685_s20, %s1685_s20, %s1686_s21  }
  0x1e   : > { %p55_p13 = scmp.ne.s32.totalorder %s1328_s26, %s1324_s25  ;;  %p56_p0 = scmp.eq.s32.totalorder %s1340_s29, 0 }
  0x1f   : > { %p1058_p3 = scmp.lt.s32.totalorder %s1340_s29, 2  ;;  %s1721_s8 = smov (%p41_p12, %s39_s8), 0 }
  0x20   : > { %1703 = sst [smem:[#allocation19_spill]] %s1721_s8  ;;  %p1468_p5 = por %p56_p0, %p55_p13 }
  0x21   : > { %p1474_p7 = por %p220_p2, %p55_p13  ;;  %s43_s15 = ssub.s32 %s1336_s28, %s1721_s8 }
  0x22   : > { %s283_s16 = sand.u32 1, %s1328_s26   ;;  %p46_p9 = scmp.eq.s32.totalorder %s43_s15, 0 }
  0x23   : > { %s1705_s13 = scalar_select %p1474_p7, 1, 0 }
  0x24   : > { %s969_s17 = sshll.u32 %s283_s16, 4  ;;  %s990_s18 = sshll.u32 %s1336_s28, 4 }
  0x25   : > { %1706 = sst [smem:[#allocation20_spill]] %s1705_s13  ;;  %s294_s20 = scalar_lea.hbm %s1677_s0, %s990_s18 }
  0x26   : > { %s1483_s19 = scalar_select %p46_p9, %s1328_s26, %s48_s11  }
  0x27   : > { %s295_s21 = sshll.u32 %s294_s20, 4  ;;  %s287_s2 = scalar_lea.vmem [#allocation2], %s969_s17  ;;  %s296_s21 = int_to_ptr.hbm [resolvable:$true] %s295_s21 }
  0x28   : > { %1707 = sst [smem:[#allocation21_spill]] %s1483_s19  ;;  %s297_s6 = sshll.u32 %s287_s2, 4  ;;  %s298_s6 = int_to_ptr.vmem [resolvable:$true] %s297_s6 }
  0x29   : > { %p1046_p2 = pnand %p1058_p3, %p1468_p5  ;;  %s307_s8 = sand.u32 1, %s1340_s29  }
  0x2a   : > { %s972_s10 = sshll.u32 %s283_s16, 2  ;;  %s284_s24 = scalar_lea.sflag [#allocation3], %s283_s16 }
  0x2b   : > { %s1708_s15 = smov 8   ;;  %s1709_s13 = smov 128  }
  0x2c   : > { %1048 = dma.hbm_to_vmem [thread:$0]  (!%p1046_p2), %s296_s21, 256, %s298_s6, %s284_s24, %s1709_s13, %s1709_s13, %s1708_s15  }
  0x2d   : > { %s973_s11 = sshll.u32 %s1336_s28, 2  ;;  %s311_s19 = scalar_lea.vmem [#allocation5], %s972_s10 }
  0x2e   : > { %s320_s26 = sshll.u32 %s311_s19, 4  ;;  %s316_s20 = scalar_lea.hbm %s1678_s1, %s973_s11  ;;  %s321_s26 = int_to_ptr.vmem [resolvable:$true] %s320_s26 }
  0x2f   : > { %s318_s2 = sshll.u32 %s316_s20, 4  ;;  %s308_s12 = scalar_lea.sflag [#allocation6], %s307_s8  ;;  %s319_s2 = int_to_ptr.hbm [resolvable:$true] %s318_s2 }
  0x30   : > { %1051 = dma.hbm_to_vmem [thread:$0]  (!%p1046_p2), %s319_s2, 64, %s321_s26, %s308_s12  }
  0x31   : > { %329 = sbr.rel (%p1442_p8) target bundleno = 668 (0x29c), region = 48  ;;  %s1503_s16 = sand.u32 (!%p1442_p8), 1, %s1324_s25  }
  0x32   : > { %s975_s6 = sshll.u32 (!%p1442_p8), %s1503_s16, 4  ;;  %s332_s24 = scalar_lea.sflag (!%p1442_p8), [#allocation3], %s1503_s16 }
  0x33   : > { %s1509_s10 = scalar_lea.vmem (!%p1442_p8), [#allocation2], %s975_s6 }
  0x36   : > { %1299 = dma.done.wait (%p1429_p4), %s332_s24, 256  }
  0x37   : > { %1301 = vsyncadd (%p1429_p4), %s332_s24, 4294967040  ;;  %s341_s26 = sand.u32 1, %s1420_s30   ;;  %s976_s14 = sshll.u32 %s1503_s16, 2 }
  0x38   : > { %s342_s21 = scalar_lea.sflag [#allocation6], %s341_s26  ;;  %s1517_s8 = scalar_lea.vmem [#allocation5], %s976_s14 }
  0x39   : > { %1303 = dma.done.wait (%p1429_p4), %s342_s21, 64  }
  0x3a   : > { %1305 = vsyncadd (%p1429_p4), %s342_s21, 4294967232 }
  0x3b   : > { %1307 = dma.done.wait (%p62_p1), [#allocation6], 6144  }
  0x3c   : > { %1309 = vsyncadd (%p62_p1), [#allocation6], 4294961152 }
  0x3d   : > { %1311 = dma.done.wait (%p62_p1), [#allocation9], 6144  }
  0x3e   : > { %1313 = vsyncadd (%p62_p1), [#allocation9], 4294961152  ;;  %v475_v0 = vld [vmem:[#allocation7 + $0x178] sm:$0xff]  ;;  %v474_v2 = vld [vmem:[#allocation7 + $0x170] sm:$0xff]  ;;  %vm399_vm0 = vcmask 1041408   ;;  %vm419_vm1 = vcmask 1045504  }
  0x3f   : > { %v443_v1 = vld [vmem:[#allocation7 + $0x78] sm:$0xff]  ;;  %532 = vmatpush.msra.mxu2 %v475_v0  ;;  %v442_v3 = vld [vmem:[#allocation7 + $0x70] sm:$0xff]  ;;  %v473_v5 = vld [vmem:[#allocation7 + $0x168] sm:$0xff]  ;;  %vm410_vm2 = vcmask 1046528   ;;  %s391_s15 = scalar_lea.vmem [#allocation10], %s975_s6  ;;  %s991_s11 = sshll.u32 %s1332_s27, 4 }
  0x40   : > { %480 = vmatpush.msra.mxu0 %v443_v1  ;;  %v459_v4 = vld [vmem:[#allocation7 + $0xf8] sm:$0xff]  ;;  %v441_v6 = vld [vmem:[#allocation7 + $0x68] sm:$0xff]  ;;  %v458_v7 = vld [vmem:[#allocation7 + $0xf0] sm:$0xff]  ;;  %s829_s2 = scalar_lea.hbm %s1684_s7, %s991_s11  ;;  %s830_s12 = sshll.u32 %s391_s15, 4  ;;  %s831_s12 = int_to_ptr.vmem [resolvable:$true] %s830_s12 }
  0x41   : > { %506 = vmatpush.msra.mxu1 %v459_v4  ;;  %533 = vmatpush.msra.mxu2 %v474_v2  ;;  %v457_v8 = vld [vmem:[#allocation7 + $0xe8] sm:$0xff]  ;;  %v472_v9 = vld [vmem:[#allocation7 + $0x160] sm:$0xff]  ;;  %v471_v12 = vld [vmem:[#allocation7 + $0x158] sm:$0xff]  ;;  %s832_s24 = sshll.u32 %s829_s2, 4  ;;  %s1266_s21 = scalar_lea.hbm %s1684_s7, 32  ;;  %s833_s24 = int_to_ptr.hbm [resolvable:$true] %s832_s24 }
  0x42   : > { %481 = vmatpush.msra.mxu0 %v442_v3  ;;  %v440_v10 = vld [vmem:[#allocation7 + $0x60] sm:$0xff]  ;;  %v439_v13 = vld [vmem:[#allocation7 + $0x58] sm:$0xff]  ;;  %v470_v15 = vld [vmem:[#allocation7 + $0x150] sm:$0xff]  ;;  %s1260_s26 = sshra.s32 %s833_s24, 4  ;;  %s1261_s26 = int_to_ptr.hbm [resolvable:$true] %s1260_s26 }
  0x43   : > { %507 = vmatpush.msra.mxu1 %v458_v7  ;;  %534 = vmatpush.msra.mxu2 %v473_v5  ;;  %v456_v11 = vld [vmem:[#allocation7 + $0xe0] sm:$0xff]  ;;  %v455_v14 = vld [vmem:[#allocation7 + $0xd8] sm:$0xff]  ;;  %v438_v16 = vld [vmem:[#allocation7 + $0x50] sm:$0xff]  ;;  %s1262_s6 = scalar_lea.hbm %s1261_s26, 16  ;;  %p1267_p10 = scmp.lt.s32.totalorder %s1261_s26, %s1684_s7 }
  0x44   : > { %482 = vmatpush.msra.mxu0 %v441_v6  ;;  %v454_v17 = vld [vmem:[#allocation7 + $0xd0] sm:$0xff]  ;;  %v469_v18 = vld [vmem:[#allocation7 + $0x148] sm:$0xff]  ;;  %v468_v21 = vld [vmem:[#allocation7 + $0x140] sm:$0xff]  ;;  %p1263_p1 = scmp.ne.s32.totalorder %s1261_s26, %s1262_s6  ;;  %p1268_p12 = scmp.lt.s32.totalorder %s1266_s21, %s1262_s6 }
  0x45   : > { %508 = vmatpush.msra.mxu1 %v457_v8  ;;  %535 = vmatpush.msra.mxu2 %v472_v9  ;;  %v437_v19 = vld [vmem:[#allocation7 + $0x48] sm:$0xff]  ;;  %v436_v22 = vld [vmem:[#allocation7 + $0x40] sm:$0xff]  ;;  %v467_v24 = vld [vmem:[#allocation7 + $0x138] sm:$0xff] }
  0x46   : > { %483 = vmatpush.msra.mxu0 %v440_v10  ;;  %v453_v20 = vld [vmem:[#allocation7 + $0xc8] sm:$0xff]  ;;  %v452_v23 = vld [vmem:[#allocation7 + $0xc0] sm:$0xff]  ;;  %v435_v25 = vld [vmem:[#allocation7 + $0x38] sm:$0xff]  ;;  %p1264_p4 = pnand %p1263_p1, %p1474_p7  ;;  %p1269_p13 = por %p1268_p12, %p1267_p10 }
  0x47   : > { %509 = vmatpush.msra.mxu1 %v456_v11  ;;  %536 = vmatpush.msra.mxu2 %v471_v12  ;;  %v451_v26 = vld [vmem:[#allocation7 + $0xb8] sm:$0xff]  ;;  %v395_v28 = vld [vmem:[%s1509_s10 + $0x8] sm:$0xff]  ;;  %v465_v32 = vld [vmem:[#allocation7 + $0x128] sm:$0xff] }
  0x48   : > { %484 = vmatpush.msra.mxu0 %v439_v13  ;;  %v394_v27 = vld [vmem:[%s1509_s10] sm:$0xff]  ;;  %v466_v29 = vld [vmem:[#allocation7 + $0x130] sm:$0xff]  ;;  %v401_v35 = vrot.slane %v395_v28, 6  ;;  %v464_v38 = vld [vmem:[#allocation7 + $0x120] sm:$0xff]  ;;  %s816_s10 = scalar_lea.sflag [#allocation4], %s1503_s16  ;;  %p1265_p8 = pneg %p1264_p4 }
  0x49   : > { %510 = vmatpush.msra.mxu1 %v455_v14  ;;  %537 = vmatpush.msra.mxu2 %v470_v15  ;;  %v434_v30 = vld [vmem:[#allocation7 + $0x30] sm:$0xff]  ;;  %v433_v33 = vld [vmem:[#allocation7 + $0x28] sm:$0xff]  ;;  %v400_v34 = vrot.slane %v394_v27, 6  ;;  %v396_v37 = vld [vmem:[%s1517_s8] sm:$0xf] }
  0x4a   : > { %485 = vmatpush.msra.mxu0 %v438_v16  ;;  %v450_v31 = vld [vmem:[#allocation7 + $0xb0] sm:$0xff]  ;;  %v449_v36 = vld [vmem:[#allocation7 + $0xa8] sm:$0xff]  ;;  %v432_v39 = vld [vmem:[#allocation7 + $0x20] sm:$0xff]  ;;  %v407_v60 = vsel %vm399_vm0, %v401_v35, %v396_v37  ;;  %p1270_p0 = pnand %p1269_p13, %p1265_p8 }
  0x4b   : > { %511 = vmatpush.msra.mxu1 %v454_v17  ;;  %538 = vmatpush.msra.mxu2 %v469_v18  ;;  %v448_v40 = vld [vmem:[#allocation7 + $0xa0] sm:$0xff]  ;;  %v463_v41 = vld [vmem:[#allocation7 + $0x118] sm:$0xff]  ;;  %v402_v43 = vsel %vm399_vm0, %v400_v34, %v401_v35  ;;  %v406_v44 = vsel %vm399_vm0, %v396_v37, %v400_v34  ;;  %v462_v46 = vld [vmem:[#allocation7 + $0x110] sm:$0xff]  ;;  %v423_v62 = vrot.slane %v407_v60, 2  ;;  %v414_v63 = vrot.slane %v407_v60, 1 }
  0x4c   : > { %486 = vmatpush.msra.mxu0 %v437_v19  ;;  %v431_v42 = vld [vmem:[#allocation7 + $0x18] sm:$0xff]  ;;  %v430_v47 = vld [vmem:[#allocation7 + $0x10] sm:$0xff]  ;;  %v420_v49 = vrot.slane %v406_v44, 2  ;;  %v421_v50 = vrot.slane %v402_v43, 2  ;;  %v461_v51 = vld [vmem:[#allocation7 + $0x108] sm:$0xff]  ;;  %v411_v54 = vrot.slane %v406_v44, 1 }
  0x4d   : > { %512 = vmatpush.msra.mxu1 %v453_v20  ;;  %539 = vmatpush.msra.mxu2 %v468_v21  ;;  %v447_v45 = vld [vmem:[#allocation7 + $0x98] sm:$0xff]  ;;  %v446_v48 = vld [vmem:[#allocation7 + $0x90] sm:$0xff]  ;;  %v429_v52 = vld [vmem:[#allocation7 + $0x8] sm:$0xff]  ;;  %v412_v55 = vrot.slane %v402_v43, 1 }
  0x4e   : > { %487 = vmatpush.msra.mxu0 %v436_v22  ;;  %v445_v53 = vld [vmem:[#allocation7 + $0x88] sm:$0xff]  ;;  %v460_v56 = vld [vmem:[#allocation7 + $0x100] sm:$0xff]  ;;  %v422_v58 = vsel %vm419_vm1, %v420_v49, %v421_v50  ;;  %v424_v0 = vsel %vm419_vm1, %v421_v50, %v423_v62  ;;  %v1117_v2 = vld [vmem:[%s1680_s3] ss:$0 sm:$0xff] }
  0x4f   : > { %513 = vmatpush.msra.mxu1 %v452_v23  ;;  %540 = vmatpush.msra.mxu2 %v467_v24  ;;  %v428_v57 = vld [vmem:[#allocation7] sm:$0xff]  ;;  %v413_v61 = vsel %vm410_vm2, %v411_v54, %v412_v55  ;;  %v415_v1 = vsel %vm410_vm2, %v412_v55, %v414_v63  ;;  %v706_v27 = vld [vmem:[#allocation8 + $0xf0] sm:$0xff]  ;;  %v1545_v28 = vld [vmem:[#allocation8 + $0x78] sm:$0xff] }
  0x50   : > { %488 = vmatpush.msra.mxu0 %v435_v25  ;;  %v444_v59 = vld [vmem:[#allocation7 + $0x80] sm:$0xff]  ;;  %v574_v25 = vlaneseq  ;;  %v1565_v49 = vld [vmem:[#allocation8 + $0x68] sm:$0xff]  ;;  %v703_v50 = vld [vmem:[#allocation8 + $0xd8] sm:$0xff] }
  0x51   : > { %514 = vmatpush.msra.mxu1 %v451_v26  ;;  %541 = vmatpush.msra.mxu2 %v466_v29  ;;  %v707_v26 = vld [vmem:[#allocation8 + $0xf8] sm:$0xff]  ;;  %v701_v55 = vld [vmem:[#allocation8 + $0xc8] sm:$0xff] }
  0x52   : > { %489 = vmatpush.msra.mxu0 %v434_v30  ;;  %718 = vmatpush.msra.mxu3 %v707_v26  ;;  %v575_v29 = vand.u32 127, %v574_v25  ;;  %v780_v54 = vld [vmem:[#allocation8 + $0x178] sm:$0xff] }
  0x53   : > { %515 = vmatpush.msra.mxu1 %v450_v31  ;;  %542 = vmatpush.msra.mxu2 %v465_v32 }
  0x54   : > { %490 = vmatpush.msra.mxu0 %v433_v33  ;;  %719 = vmatpush.msra.mxu3 %v706_v27  ;;  %vm576_vm3 = vcmp.lt.s32.totalorder %v575_v29, 32  ;;  %v767_v27 = vld [vmem:[#allocation8 + $0x110] sm:$0xff]  ;;  %v766_v29 = vld [vmem:[#allocation8 + $0x108] sm:$0xff] }
  0x55   : > { %516 = vmatpush.msra.mxu1 %v449_v36  ;;  %543 = vmatpush.msra.mxu2 %v464_v38 }
  0x56   : > { %491 = vmatpush.msra.mxu0 %v432_v39 }
  0x57   : > { %517 = vmatpush.msra.mxu1 %v448_v40  ;;  %544 = vmatpush.msra.mxu2 %v463_v41 }
  0x58   : > { %492 = vmatpush.msra.mxu0 %v431_v42 }
  0x59   : > { %518 = vmatpush.msra.mxu1 %v447_v45  ;;  %545 = vmatpush.msra.mxu2 %v462_v46  ;;  %v705_v46 = vld [vmem:[#allocation8 + $0xe8] sm:$0xff] }
  0x5a   : > { %493 = vmatpush.msra.mxu0 %v430_v47  ;;  %v1562_v47 = vld [vmem:[#allocation8 + $0x70] sm:$0xff]  ;;  %720 = vmatpush.msra.mxu3 %v705_v46 }
  0x5b   : > { %519 = vmatpush.msra.mxu1 %v446_v48  ;;  %546 = vmatpush.msra.mxu2 %v461_v51  ;;  %v704_v48 = vld [vmem:[#allocation8 + $0xe0] sm:$0xff] }
  0x5c   : > { %494 = vmatpush.msra.mxu0 %v429_v52  ;;  %721 = vmatpush.msra.mxu3 %v704_v48  ;;  %v1568_v51 = vld [vmem:[#allocation8 + $0x60] sm:$0xff]  ;;  %v702_v52 = vld [vmem:[#allocation8 + $0xd0] sm:$0xff] }
  0x5d   : > { %520 = vmatpush.msra.mxu1 %v445_v53  ;;  %547 = vmatpush.msra.mxu2 %v460_v56  ;;  %v1571_v53 = vld [vmem:[#allocation8 + $0x58] sm:$0xff]  ;;  %v1574_v56 = vld [vmem:[#allocation8 + $0x50] sm:$0xff] }
  0x5e   : > { %495 = vmatpush.msra.mxu0 %v428_v57  ;;  %548 = vmatmul.f32.vlgmr.msra.gmra.mxu2 %v422_v58  ;;  %v779_v57 = vld [vmem:[#allocation8 + $0x170] sm:$0xff]  ;;  %v700_v58 = vld [vmem:[#allocation8 + $0xc0] sm:$0xff] }
  0x5f   : > { %496 = vmatmul.f32.vlgmr.msra.gmra.mxu0 %v406_v44  ;;  %521 = vmatpush.msra.mxu1 %v444_v59  ;;  %v1577_v59 = vld [vmem:[#allocation8 + $0x48] sm:$0xff] }
  0x60   : > { %522 = vmatmul.f32.vlgmr.msra.gmra.mxu1 %v413_v61  ;;  %741 = vmatpush.msrb.mxu0 %v1545_v28  ;;  %v699_v61 = vld [vmem:[#allocation8 + $0xb8] sm:$0xff] }
  0x61   : > { %722 = vmatpush.msra.mxu3 %v703_v50  ;;  %788 = vmatpush.msrb.mxu1 %v780_v54 }
  0x62   : > { %742 = vmatpush.msrb.mxu0 %v1562_v47  ;;  %1008 = vmatpush.msrb.mxu2 %v780_v54 }
  0x63   : > { %723 = vmatpush.msra.mxu3 %v702_v52  ;;  %789 = vmatpush.msrb.mxu1 %v779_v57 }
  0x64   : > { %743 = vmatpush.msrb.mxu0 %v1565_v49  ;;  %1009 = vmatpush.msrb.mxu2 %v779_v57  ;;  %v1346_v57 = vmov 0.0  }
  0x65   : > { %724 = vmatpush.msra.mxu3 %v701_v55 }
  0x66   : > { %551 = vmatmul.f32.gmra.mxu2 %v424_v0  ;;  %744 = vmatpush.msrb.mxu0 %v1568_v51  ;;  %v698_v0 = vld [vmem:[#allocation8 + $0xb0] sm:$0xff] }
  0x67   : > { %499 = vmatmul.f32.gmra.mxu0 %v402_v43  ;;  %725 = vmatpush.msra.mxu3 %v700_v58 }
  0x68   : > { %525 = vmatmul.f32.gmra.mxu1 %v415_v1  ;;  %745 = vmatpush.msrb.mxu0 %v1571_v53  ;;  %v1583_v1 = vld [vmem:[#allocation8 + $0x38] sm:$0xff] }
  0x69   : > { %726 = vmatpush.msra.mxu3 %v699_v61 }
  0x6a   : > { %746 = vmatpush.msrb.mxu0 %v1574_v56 }
  0x6b   : > { %727 = vmatpush.msra.mxu3 %v698_v0 }
  0x6c   : > { %747 = vmatpush.msrb.mxu0 %v1577_v59 }
  0x6e   : > { %554 = vmatmul.f32.gmra.mxu2 %v423_v62  ;;  %v1580_v62 = vld [vmem:[#allocation8 + $0x40] sm:$0xff] }
  0x6f   : > { %502 = vmatmul.f32.gmra.mxu0 %v407_v60  ;;  %v778_v60 = vld [vmem:[#allocation8 + $0x168] sm:$0xff] }
  0x70   : > { %528 = vmatmul.f32.gmra.mxu1 %v414_v63  ;;  %1010 = vmatpush.msrb.mxu2 %v778_v60  ;;  %v777_v63 = vld [vmem:[#allocation8 + $0x160] sm:$0xff] }
  0x71   : > { %790 = vmatpush.msrb.mxu1 %v778_v60  ;;  %748 = vmatpush.msrb.mxu0 %v1580_v62 }
  0x72   : > { %1011 = vmatpush.msrb.mxu2 %v777_v63 }
  0x73   : > { %791 = vmatpush.msrb.mxu1 %v777_v63  ;;  %749 = vmatpush.msrb.mxu0 %v1583_v1 }
  0xdc   : > { %v497_v3 = vpop.f32.mrf.mxu0 }
  0xdd   : > { %v498_v4 = vadd.f32 %v1117_v2, %v497_v3  ;;  %v523_v5 = vpop.f32.mrf.mxu1  ;;  %v697_v3 = vld [vmem:[#allocation8 + $0xa8] sm:$0xff] }
  0xde   : > { %728 = vmatpush.msra.mxu3 %v697_v3 }
  0xdf   : > { %v524_v6 = vadd.f32 %v523_v5, %v498_v4  ;;  %v1586_v4 = vld [vmem:[#allocation8 + $0x30] sm:$0xff] }
  0xe0   : > { %750 = vmatpush.msrb.mxu0 %v1586_v4  ;;  %v775_v5 = vld [vmem:[#allocation8 + $0x150] sm:$0xff] }
  0xe1   : > { %v549_v7 = vpop.f32.mrf.mxu2 }
  0xe2   : > { %v550_v8 = vadd.f32 %v549_v7, %v524_v6  ;;  %v696_v6 = vld [vmem:[#allocation8 + $0xa0] sm:$0xff]  ;;  %v1589_v7 = vld [vmem:[#allocation8 + $0x28] sm:$0xff] }
  0xe3   : > { %729 = vmatpush.msra.mxu3 %v696_v6  ;;  %751 = vmatpush.msrb.mxu0 %v1589_v7 }
  0xe4   : > { %v500_v9 = vpop.f32.mrf.mxu0  ;;  %v558_v10 = vmax.f32 %v550_v8, 0.0  ;;  %v774_v8 = vld [vmem:[#allocation8 + $0x148] sm:$0xff] }
  0xe5   : > { %v501_v11 = vadd.f32 %v1117_v2, %v500_v9  ;;  %v526_v12 = vpop.f32.mrf.mxu1  ;;  %v695_v9 = vld [vmem:[#allocation8 + $0x98] sm:$0xff] }
  0xe6   : > { %561 = vadd.xlane.f32.xlu0 %v558_v10  ;;  %730 = vmatpush.msra.mxu3 %v695_v9 }
  0xe7   : > { %v527_v13 = vadd.f32 %v526_v12, %v501_v11  ;;  %v773_v11 = vld [vmem:[#allocation8 + $0x140] sm:$0xff]  ;;  %v694_v12 = vld [vmem:[#allocation8 + $0x90] sm:$0xff] }
  0xe8   : > { %731 = vmatpush.msra.mxu3 %v694_v12 }
  0xe9   : > { %v552_v14 = vpop.f32.mrf.mxu2 }
  0xea   : > { %v553_v15 = vadd.f32 %v552_v14, %v527_v13  ;;  %v1595_v13 = vld [vmem:[#allocation8 + $0x18] sm:$0xff] }
  0xeb   : > { %v772_v14 = vld [vmem:[#allocation8 + $0x138] sm:$0xff] }
  0xec   : > { %v503_v16 = vpop.f32.mrf.mxu0  ;;  %v559_v17 = vmax.f32 %v553_v15, 0.0  ;;  %v693_v15 = vld [vmem:[#allocation8 + $0x88] sm:$0xff] }
  0xed   : > { %v504_v18 = vadd.f32 %v1117_v2, %v503_v16  ;;  %v529_v19 = vpop.f32.mrf.mxu1  ;;  %v776_v2 = vld [vmem:[#allocation8 + $0x158] sm:$0xff]  ;;  %v1598_v16 = vld [vmem:[#allocation8 + $0x10] sm:$0xff]  ;;  %732 = vmatpush.msra.mxu3 %v693_v15 }
  0xee   : > { %563 = vadd.xlane.f32.xlu0 %v559_v17  ;;  %792 = vmatpush.msrb.mxu1 %v776_v2 }
  0xef   : > { %v530_v20 = vadd.f32 %v529_v19, %v504_v18  ;;  %1012 = vmatpush.msrb.mxu2 %v776_v2  ;;  %v692_v18 = vld [vmem:[#allocation8 + $0x80] sm:$0xff]  ;;  %v1601_v19 = vld [vmem:[#allocation8 + $0x8] sm:$0xff] }
  0xf0   : > { %793 = vmatpush.msrb.mxu1 %v775_v5  ;;  %733 = vmatpush.msra.mxu3 %v692_v18 }
  0xf1   : > { %v555_v21 = vpop.f32.mrf.mxu2  ;;  %1013 = vmatpush.msrb.mxu2 %v775_v5 }
  0xf2   : > { %v556_v22 = vadd.f32 %v555_v21, %v530_v20  ;;  %794 = vmatpush.msrb.mxu1 %v774_v8  ;;  %v770_v20 = vld [vmem:[#allocation8 + $0x128] sm:$0xff]  ;;  %992 = vmatpush.msrb.mxu3 %v1545_v28  ;;  %v1605_v21 = vld [vmem:[#allocation8] sm:$0xff] }
  0xf3   : > { %1014 = vmatpush.msrb.mxu2 %v774_v8 }
  0xf4   : > { %v560_v23 = vmax.f32 %v556_v22, 0.0  ;;  %795 = vmatpush.msrb.mxu1 %v773_v11  ;;  %v769_v22 = vld [vmem:[#allocation8 + $0x120] sm:$0xff]  ;;  %993 = vmatpush.msrb.mxu3 %v1562_v47 }
  0xf5   : > { %1015 = vmatpush.msrb.mxu2 %v773_v11 }
  0xf6   : > { %v565_v24 = vsel %vm399_vm0, %v560_v23, 0.0  ;;  %796 = vmatpush.msrb.mxu1 %v772_v14  ;;  %994 = vmatpush.msrb.mxu3 %v1565_v49 }
  0xf7   : > { %566 = vadd.xlane.f32.xlu1 %v565_v24  ;;  %1016 = vmatpush.msrb.mxu2 %v772_v14  ;;  %v768_v24 = vld [vmem:[#allocation8 + $0x118] sm:$0xff] }
  0xf8   : > { %995 = vmatpush.msrb.mxu3 %v1568_v51 }
  0xfa   : > { %996 = vmatpush.msrb.mxu3 %v1571_v53  ;;  %v1119_v53 = vld [vmem:[%s1682_s5] ss:$0 sm:$0xff] }
  0xfc   : > { %997 = vmatpush.msrb.mxu3 %v1574_v56 }
  0xfe   : > { %998 = vmatpush.msrb.mxu3 %v1577_v59 }
 0x100   : > { %999 = vmatpush.msrb.mxu3 %v1580_v62 }
 0x102   : > { %1000 = vmatpush.msrb.mxu3 %v1583_v1 }
 0x104   : > { %1001 = vmatpush.msrb.mxu3 %v1586_v4 }
 0x106   : > { %1002 = vmatpush.msrb.mxu3 %v1589_v7 }
 0x159   : > { %v562_v30 = vpop.xlane.xlu0 %561 }
 0x15a   : > { %v568_v31 = vmul.f32 0.03125, %v562_v30  ;;  %v765_v30 = vld [vmem:[#allocation8 + $0x100] sm:$0xff] }
 0x15c   : > { %v571_v32 = vsub.f32 %v558_v10, %v568_v31  ;;  %v1592_v10 = vld [vmem:[#allocation8 + $0x20] sm:$0xff] }
 0x15d   : > { %752 = vmatpush.msrb.mxu0 %v1592_v10  ;;  %1003 = vmatpush.msrb.mxu3 %v1592_v10 }
 0x15e   : > { %v1549_v33 = vsel %vm576_vm3, %v571_v32, 0.0 }
 0x15f   : > { %v582_v34 = vmul.f32 %v1549_v33, %v1549_v33  ;;  %753 = vmatpush.msrb.mxu0 %v1595_v13  ;;  %1004 = vmatpush.msrb.mxu3 %v1595_v13 }
 0x161   : > { %585 = vadd.xlane.f32.xlu1 %v582_v34  ;;  %v564_v35 = vpop.xlane.xlu0 %563  ;;  %754 = vmatpush.msrb.mxu0 %v1598_v16 }
 0x162   : > { %v569_v36 = vmul.f32 0.03125, %v564_v35  ;;  %1005 = vmatpush.msrb.mxu3 %v1598_v16 }
 0x163   : > { %755 = vmatpush.msrb.mxu0 %v1601_v19 }
 0x164   : > { %v572_v37 = vsub.f32 %v559_v17, %v569_v36  ;;  %v771_v17 = vld [vmem:[#allocation8 + $0x130] sm:$0xff]  ;;  %1006 = vmatpush.msrb.mxu3 %v1601_v19 }
 0x165   : > { %797 = vmatpush.msrb.mxu1 %v771_v17  ;;  %1017 = vmatpush.msrb.mxu2 %v771_v17 }
 0x166   : > { %v1553_v38 = vsel %vm576_vm3, %v572_v37, 0.0  ;;  %756 = vmatpush.msrb.mxu0 %v1605_v21  ;;  %1007 = vmatpush.msrb.mxu3 %v1605_v21 }
 0x167   : > { %v583_v39 = vmul.f32 %v1553_v38, %v1553_v38  ;;  %798 = vmatpush.msrb.mxu1 %v770_v20  ;;  %1018 = vmatpush.msrb.mxu2 %v770_v20 }
 0x169   : > { %587 = vadd.xlane.f32.xlu2 %v583_v39  ;;  %799 = vmatpush.msrb.mxu1 %v769_v22  ;;  %v646_v39 = vshrl.u32 %v574_v25, 7  ;;  %v1118_v25 = vld [vmem:[%s1681_s4] ss:$0 sm:$0xff] }
 0x16a   : > { %v567_v40 = vpop.xlane.xlu1 %566  ;;  %1019 = vmatpush.msrb.mxu2 %v769_v22 }
 0x16b   : > { %v570_v41 = vmul.f32 0.03125, %v567_v40  ;;  %800 = vmatpush.msrb.mxu1 %v768_v24  ;;  %v980_v46 = vadd.s32 4294967295, %v646_v39  ;;  %v648_v2 = vadd.s32 16, %v646_v39 }
 0x16c   : > { %1020 = vmatpush.msrb.mxu2 %v768_v24 }
 0x16d   : > { %v573_v42 = vsub.f32 %v560_v23, %v570_v41  ;;  %801 = vmatpush.msrb.mxu1 %v767_v27  ;;  %vm657_vm7 = vcmp.ge.s32.totalorder %v980_v46, 0  ;;  %v982_v7 = vadd.s32 4294967295, %v648_v2 }
 0x16e   : > { %1021 = vmatpush.msrb.mxu2 %v767_v27  ;;  %v983_v58 = vsel %vm657_vm7, 1.0, %v1346_v57 }
 0x16f   : > { %v1557_v43 = vsel %vm576_vm3, %v573_v42, 0.0  ;;  %802 = vmatpush.msrb.mxu1 %v766_v29  ;;  %vm662_vm14 = vcmp.lt.s32.totalorder %v982_v7, 16 }
 0x170   : > { %v584_v44 = vmul.f32 %v1557_v43, %v1557_v43  ;;  %1022 = vmatpush.msrb.mxu2 %v766_v29  ;;  %v984_v17 = vsel %vm662_vm14, 1.0, %v1346_v57 }
 0x171   : > { %803 = vmatpush.msrb.mxu1 %v765_v30 }
 0x172   : > { %v589_v45 = vsel %vm399_vm0, %v584_v44, 0.0  ;;  %1023 = vmatpush.msrb.mxu2 %v765_v30 }
 0x173   : > { %590 = vadd.xlane.f32.xlu2 %v589_v45 }
 0x1d4   : > { %v586_v23 = vpop.xlane.xlu1 %585 }
 0x1d5   : > { %v592_v26 = vmul.f32 0.03125, %v586_v23 }
 0x1d7   : > { %v595_v28 = vadd.f32 1e-05, %v592_v26 }
 0x1d9   : > { %1120 = vrsqrt.f32 %v595_v28  ;;  %vm604_vm5 = vweird.f32 %v595_v28 }
 0x1dc   : > { %v588_v31 = vpop.xlane.xlu2 %587 }
 0x1dd   : > { %v593_v32 = vmul.f32 0.03125, %v588_v31 }
 0x1df   : > { %v1121_v34 = vpop.eup %1120  ;;  %v596_v35 = vadd.f32 1e-05, %v593_v32 }
 0x1e0   : > { %v599_v36 = vmul.f32 %v1121_v34, %v595_v28  ;;  %vm605_vm4 = vweird.f32 %v1121_v34 }
 0x1e1   : > { %1122 = vrsqrt.f32 %v596_v35  ;;  %vm606_vm6 = vmor %vm604_vm5, %vm605_vm4  ;;  %vm614_vm9 = vweird.f32 %v596_v35 }
 0x1e2   : > { %v600_v37 = vmul.f32 %v1121_v34, %v599_v36 }
 0x1e4   : > { %v601_v40 = vmul.f32 0.5, %v600_v37 }
 0x1e6   : > { %v602_v41 = vsub.f32 1.5, %v601_v40  ;;  %v591_v42 = vpop.xlane.xlu2 %590 }
 0x1e7   : > { %v1123_v44 = vpop.eup %1122  ;;  %v594_v45 = vmul.f32 0.03125, %v591_v42 }
 0x1e8   : > { %v603_v47 = vmul.f32 %v1121_v34, %v602_v41  ;;  %v609_v48 = vmul.f32 %v1123_v44, %v596_v35  ;;  %vm615_vm8 = vweird.f32 %v1123_v44 }
 0x1e9   : > { %v597_v49 = vadd.f32 1e-05, %v594_v45  ;;  %vm616_vm10 = vmor %vm614_vm9, %vm615_vm8 }
 0x1ea   : > { %v607_v50 = vsel %vm606_vm6, %v1121_v34, %v603_v47  ;;  %v610_v51 = vmul.f32 %v1123_v44, %v609_v48 }
 0x1eb   : > { %v628_v52 = vmul.f32 %v607_v50, %v1549_v33  ;;  %1124 = vrsqrt.f32 %v597_v49  ;;  %vm624_vm12 = vweird.f32 %v597_v49 }
 0x1ec   : > { %v611_v54 = vmul.f32 0.5, %v610_v51 }
 0x1ed   : > { %v635_v55 = vmul.f32 %v1118_v25, %v628_v52 }
 0x1ee   : > { %v612_v56 = vsub.f32 1.5, %v611_v54 }
 0x1ef   : > { %v642_v59 = vadd.f32 %v1119_v53, %v635_v55 }
 0x1f0   : > { %v613_v33 = vmul.f32 %v1123_v44, %v612_v56 }
 0x1f1   : > { %v1125_v60 = vpop.eup %1124  ;;  %v672_v61 = vmul.f32 %v983_v58, %v642_v59 }
 0x1f2   : > { %v617_v62 = vsel %vm616_vm10, %v1123_v44, %v613_v33  ;;  %v619_v63 = vmul.f32 %v1125_v60, %v597_v49  ;;  %vm625_vm11 = vweird.f32 %v1125_v60 }
 0x1f3   : > { %v629_v0 = vmul.f32 %v617_v62, %v1553_v38  ;;  %757 = vmatmul.f32.vlgmr.msrb.gmra.mxu0 %v672_v61  ;;  %v711_v8 = vrot.slane %v672_v61, 1  ;;  %v781_v10 = vrot.slane %v672_v61, 2  ;;  %vm626_vm13 = vmor %vm624_vm12, %vm625_vm11 }
 0x1f4   : > { %v620_v1 = vmul.f32 %v1125_v60, %v619_v63 }
 0x1f5   : > { %v636_v3 = vmul.f32 %v1118_v25, %v629_v0 }
 0x1f6   : > { %v621_v4 = vmul.f32 0.5, %v620_v1 }
 0x1f7   : > { %v643_v5 = vadd.f32 %v1119_v53, %v636_v3 }
 0x1f8   : > { %v622_v6 = vsub.f32 1.5, %v621_v4 }
 0x1f9   : > { %v712_v9 = vrot.slane %v643_v5, 1  ;;  %v782_v11 = vrot.slane %v643_v5, 2 }
 0x1fa   : > { %v623_v12 = vmul.f32 %v1125_v60, %v622_v6 }
 0x1fb   : > { %v713_v13 = vsel %vm410_vm2, %v711_v8, %v712_v9  ;;  %v783_v38 = vsel %vm419_vm1, %v781_v10, %v782_v11 }
 0x1fc   : > { %v627_v14 = vsel %vm626_vm13, %v1125_v60, %v623_v12  ;;  %734 = vmatmul.f32.vlgmr.msra.gmra.mxu3 %v713_v13  ;;  %804 = vmatmul.f32.vlgmr.msrb.gmra.mxu1 %v783_v38 }
 0x1fd   : > { %v630_v15 = vmul.f32 %v627_v14, %v1557_v43 }
 0x1ff   : > { %v637_v16 = vmul.f32 %v1118_v25, %v630_v15 }
 0x201   : > { %v644_v18 = vadd.f32 %v1119_v53, %v637_v16 }
 0x203   : > { %v674_v19 = vmul.f32 %v984_v17, %v644_v18 }
 0x205   : > { %v714_v20 = vrot.slane %v674_v19, 1  ;;  %v784_v21 = vrot.slane %v674_v19, 2 }
 0x207   : > { %v715_v22 = vsel %vm410_vm2, %v712_v9, %v714_v20  ;;  %v785_v23 = vsel %vm419_vm1, %v782_v11, %v784_v21 }
 0x208   : > { %737 = vmatmul.f32.gmra.mxu3 %v715_v22  ;;  %807 = vmatmul.f32.vlgmr.msrb.gmra.mxu2 %v785_v23 }
 0x210   : > { %760 = vmatmul.f32.vlgmr.msrb.gmra.mxu3 %v643_v5 }
 0x270   : > { %v758_v24 = vpop.f32.mrf.mxu0 }
 0x279   : > { %v805_v43 = vpop.f32.mrf.mxu1 }
 0x27f   : > { %v735_v26 = vpop.f32.mrf.mxu3 }
 0x280   : > { %v759_v27 = vadd.f32 %v758_v24, %v735_v26 }
 0x282   : > { %v811_v28 = vadd.f32 %v805_v43, %v759_v27 }
 0x284   : > { %813 = vst [vmem:[%s391_s15] sm:$0xff] %v811_v28 }
 0x28b   : > { %v738_v29 = vpop.f32.mrf.mxu3  ;;  %v808_v32 = vpop.f32.mrf.mxu2 }
 0x293   : > { %v761_v30 = vpop.f32.mrf.mxu3 }
 0x294   : > { %v762_v31 = vadd.f32 %v761_v30, %v738_v29 }
 0x296   : > { %v812_v34 = vadd.f32 %v808_v32, %v762_v31 }
 0x298   : > { %814 = vst [vmem:[%s391_s15 + $0x8] sm:$0xff] %v812_v34 }
 0x299   : > { %1273 = shalt.err (!%p1270_p0)
}
 0x29a   : > { %s1347_s16 = smov 128   ;;  %s1348_s9 = smov 8  }
 0x29b   : > { %1036 = dma.vmem_to_hbm [thread:$0]  (%p1474_p7), %s831_s12, 256, %s833_s24, %s816_s10, %s1347_s16, %s1347_s16, %s1348_s9  }
 0x29c PF: > { %s1711_s13 = sld [smem:[#allocation16_spill]]  ;;  %p1053_p3 = pnand %p968_p11, %p1434_p6 }
 0x29e   : > { %p1054_p5 = pneg %p1053_p3 }
 0x2a2   : > { %s847_s19 = sand.u32 1, %s1711_s13  }
 0x2a3   : > { %s848_s23 = scalar_lea.sflag [#allocation4], %s847_s19 }
 0x2a4   : > { %1315 = dma.done.wait (%p1054_p5), %s848_s23, 256  }
 0x2a5   : > { %1317 = vsyncadd (%p1054_p5), %s848_s23, 4294967040  ;;  %s27_s29 = sadd.s32 1, %s1340_s29   ;;  %s1713_s15 = sld [smem:[#allocation17_spill]] }
 0x2a6   : > { %p24_p9 = scmp.ge.s32.totalorder %s27_s29, 4   ;;  %s1714_s26 = sld [smem:[#allocation21_spill]] }
 0x2a7   : > { %s1715_s11 = sld [smem:[#allocation19_spill]]  ;;  %s1716_s24 = smov %s1324_s25 }
 0x2a8   : > { %s1718_s27 = smov %s1336_s28 }
 0x2a9   :  { %26 = sbr.rel (!%p24_p9) target bundleno = 12 (0xc), region = 116 }
 0x2ab   : > { %s1717_s25 = smov %s1713_s15 }
 0x2ad   : > { %s1719_s28 = smov %s1715_s11 }
 0x2ae   :  { %854 = vsyncpa [#allocation3], 1 }
 0x2af   :  { %856 = vsyncpa [#allocation3 + $0x1], 1 }
 0x2b0   :  { %857 = vsyncpa [#allocation6], 1 }
 0x2b1   :  { %859 = vsyncpa [#allocation6 + $0x1], 1 }
 0x2b2   :  { %860 = vsyncpa [#allocation9], 1 }
 0x2b3   :  { %861 = vsyncpa [#allocation4], 1 }
 0x2b4   :  { %863 = vsyncpa [#allocation4 + $0x1], 1 }

// kernel: tpu_custom_call.1
= control target key start
LH: loop header
LB: loop body
LE: loop exit
PB: predicated region body
PF: predicated region fallthrough
CT: control target
= control target key end

     0   :  { %s1677_s0 = inlined_call_operand.hbm [shape: f32[2,16,128], index: 0, kind: input, shape index: {}]   ;;  %s1678_s1 = inlined_call_operand.hbm [shape: f32[2,1,4,128], index: 1, kind: input, shape index: {}]   ;;  %s1679_s2 = inlined_call_operand.hbm [shape: f32[384,128], index: 2, kind: input, shape index: {}]   ;;  %s1680_s3 = inlined_call_operand.vmem [shape: f32[1,128], index: 3, kind: input, shape index: {}]   ;;  %s1681_s4 = inlined_call_operand.vmem [shape: f32[1,128], index: 4, kind: input, shape index: {}]   ;;  %s1682_s5 = inlined_call_operand.vmem [shape: f32[1,128], index: 5, kind: input, shape index: {}]   ;;  %s1683_s6 = inlined_call_operand.hbm [shape: f32[3,128,128], index: 6, kind: input, shape index: {}]   ;;  %s1684_s7 = inlined_call_operand.hbm [shape: f32[2,16,128], index: 7, kind: output, shape index: {}]  }
   0x1   :  { %1693 = sst [smem:[#allocation22_spill]] %s1679_s2 }
   0x2   :  { %1694 = sst [smem:[#allocation23_spill]] %s1683_s6 }
   0x3   :  { %12 = vsyncpa [#allocation3], 0 }
   0x4   :  { %14 = vsyncpa [#allocation3 + $0x1], 0 }
   0x5   :  { %15 = vsyncpa [#allocation6], 0 }
   0x6   :  { %17 = vsyncpa [#allocation6 + $0x1], 0 }
   0x7   :  { %18 = vsyncpa [#allocation9], 0 }
   0x8   :  { %19 = vsyncpa [#allocation4], 0 }
   0x9   :  { %21 = vsyncpa [#allocation4 + $0x1], 0  ;;  %s1389_s24 = smov 0   ;;  %s1391_s25 = smov 0  }
   0xa   :  { %s1393_s26 = smov 0   ;;  %s1395_s27 = smov 0  }
   0xb   :  { %s1397_s28 = smov 0   ;;  %s1399_s29 = smov 0  }
   0xc LB: > { %1695 = sst [smem:[#allocation16_spill]] %s1320_s24  ;;  %s1420_s30 = sadd.s32 4294967295, %s1340_s29   ;;  %s1340_s29 = sphi %s1399_s29, %s27_s29   ;;  %s1336_s28 = sphi %s1397_s28, %s1719_s28   ;;  %s1332_s27 = sphi %s1395_s27, %s1718_s27   ;;  %s1328_s26 = sphi %s1393_s26, %s1714_s26   ;;  %s1324_s25 = sphi %s1391_s25, %s1717_s25   ;;  %s1320_s24 = sphi %s1389_s24, %s1716_s24  }
   0xd   : > { %1696 = sst [smem:[#allocation17_spill]] %s1328_s26  ;;  %s964_s8 = sadd.s32 4294967294, %s1340_s29  }
   0xe   : > { %p61_p0 = scmp.ne.s32.totalorder %s1324_s25, %s1320_s24  ;;  %p62_p1 = scmp.eq.s32.totalorder %s1420_s30, 0 }
   0xf   : > { %p220_p2 = scmp.eq.s32.totalorder %s1420_s30, 1  ;;  %p226_p3 = scmp.eq.s32.totalorder %s964_s8, 1 }
  0x10   : > { %p1429_p4 = por %p62_p1, %p61_p0  ;;  %p965_p5 = scmp.ge.s32.totalorder %s1340_s29, 1 }
  0x11   : > { %p1434_p6 = por %p226_p3, %p61_p0  ;;  %p233_p7 = scmp.lt.s32.totalorder %s1340_s29, 3 }
  0x12   : > { %s1700_s2 = sld [smem:[#allocation22_spill]]  ;;  %s1342_s15 = smov [#allocation7]  }
  0x13   : > { %s1698_s10 = scalar_select %p1434_p6, 1, 0 }
  0x14   : > { %p1442_p8 = pnand %p965_p5, %p233_p7  ;;  %s246_s16 = sshll.u32 %s1342_s15, 4  ;;  %s247_s16 = int_to_ptr.vmem [resolvable:$true] %s246_s16 }
  0x15   : > { %1699 = sst [smem:[#allocation18_spill]] %s1698_s10  ;;  %p968_p11 = scmp.ge.s32.totalorder %s1340_s29, 2 }
  0x16   : > { %p1038_p9 = pneg %p1442_p8  ;;  %s1702_s6 = sld [smem:[#allocation23_spill]] }
  0x17   : > { %s1685_s20 = smov 128   ;;  %s1686_s21 = smov 8  }
  0x18   : > { %s244_s13 = sshll.u32 %s1700_s2, 4  ;;  %p1039_p10 = pnand %p1038_p9, %p62_p1  ;;  %s245_s13 = int_to_ptr.hbm [resolvable:$true] %s244_s13 }
  0x19   : > { %s1345_s22 = smov [#allocation8]   ;;  %s39_s8 = sadd.s32 1, %s1336_s28 }
  0x1a   : > { %1041 = dma.hbm_to_vmem [thread:$0]  (!%p1039_p10), %s245_s13, 6144, %s247_s16, [#allocation6], %s1685_s20, %s1685_s20, %s1686_s21  }
  0x1b   : > { %s269_s23 = sshll.u32 %s1345_s22, 4  ;;  %s48_s11 = sadd.s32 1, %s1328_s26  ;;  %s270_s23 = int_to_ptr.vmem [resolvable:$true] %s269_s23 }
  0x1c   : > { %s267_s19 = sshll.u32 %s1702_s6, 4  ;;  %p41_p12 = scmp.ge.s32.totalorder %s39_s8, 2  ;;  %s268_s19 = int_to_ptr.hbm [resolvable:$true] %s267_s19 }
  0x1d   : > { %1044 = dma.hbm_to_vmem [thread:$0]  (!%p1039_p10), %s268_s19, 6144, %s270_s23, [#allocation9], %s1685_s20, %s1685_s20, %s1686_s21  }
  0x1e   : > { %p55_p13 = scmp.ne.s32.totalorder %s1328_s26, %s1324_s25  ;;  %p56_p0 = scmp.eq.s32.totalorder %s1340_s29, 0 }
  0x1f   : > { %p1058_p3 = scmp.lt.s32.totalorder %s1340_s29, 2  ;;  %s1721_s8 = smov (%p41_p12, %s39_s8), 0 }
  0x20   : > { %1703 = sst [smem:[#allocation19_spill]] %s1721_s8  ;;  %p1468_p5 = por %p56_p0, %p55_p13 }
  0x21   : > { %p1474_p7 = por %p220_p2, %p55_p13  ;;  %s43_s15 = ssub.s32 %s1336_s28, %s1721_s8 }
  0x22   : > { %s283_s16 = sand.u32 1, %s1328_s26   ;;  %p46_p9 = scmp.eq.s32.totalorder %s43_s15, 0 }
  0x23   : > { %s1705_s13 = scalar_select %p1474_p7, 1, 0 }
  0x24   : > { %s969_s17 = sshll.u32 %s283_s16, 4  ;;  %s990_s18 = sshll.u32 %s1336_s28, 4 }
  0x25   : > { %1706 = sst [smem:[#allocation20_spill]] %s1705_s13  ;;  %s294_s20 = scalar_lea.hbm %s1677_s0, %s990_s18 }
  0x26   : > { %s1483_s19 = scalar_select %p46_p9, %s1328_s26, %s48_s11  }
  0x27   : > { %s295_s21 = sshll.u32 %s294_s20, 4  ;;  %s287_s2 = scalar_lea.vmem [#allocation2], %s969_s17  ;;  %s296_s21 = int_to_ptr.hbm [resolvable:$true] %s295_s21 }
  0x28   : > { %1707 = sst [smem:[#allocation21_spill]] %s1483_s19  ;;  %s297_s6 = sshll.u32 %s287_s2, 4  ;;  %s298_s6 = int_to_ptr.vmem [resolvable:$true] %s297_s6 }
  0x29   : > { %p1046_p2 = pnand %p1058_p3, %p1468_p5  ;;  %s307_s8 = sand.u32 1, %s1340_s29  }
  0x2a   : > { %s972_s10 = sshll.u32 %s283_s16, 2  ;;  %s284_s24 = scalar_lea.sflag [#allocation3], %s283_s16 }
  0x2b   : > { %s1708_s15 = smov 8   ;;  %s1709_s13 = smov 128  }
  0x2c   : > { %1048 = dma.hbm_to_vmem [thread:$0]  (!%p1046_p2), %s296_s21, 256, %s298_s6, %s284_s24, %s1709_s13, %s1709_s13, %s1708_s15  }
  0x2d   : > { %s973_s11 = sshll.u32 %s1336_s28, 2  ;;  %s311_s19 = scalar_lea.vmem [#allocation5], %s972_s10 }
  0x2e   : > { %s320_s26 = sshll.u32 %s311_s19, 4  ;;  %s316_s20 = scalar_lea.hbm %s1678_s1, %s973_s11  ;;  %s321_s26 = int_to_ptr.vmem [resolvable:$true] %s320_s26 }
  0x2f   : > { %s318_s2 = sshll.u32 %s316_s20, 4  ;;  %s308_s12 = scalar_lea.sflag [#allocation6], %s307_s8  ;;  %s319_s2 = int_to_ptr.hbm [resolvable:$true] %s318_s2 }
  0x30   : > { %1051 = dma.hbm_to_vmem [thread:$0]  (!%p1046_p2), %s319_s2, 64, %s321_s26, %s308_s12  }
  0x31   : > { %329 = sbr.rel (%p1442_p8) target bundleno = 668 (0x29c), region = 48  ;;  %s1503_s16 = sand.u32 (!%p1442_p8), 1, %s1324_s25  }
  0x32   : > { %s975_s6 = sshll.u32 (!%p1442_p8), %s1503_s16, 4  ;;  %s332_s24 = scalar_lea.sflag (!%p1442_p8), [#allocation3], %s1503_s16 }
  0x33   : > { %s1509_s10 = scalar_lea.vmem (!%p1442_p8), [#allocation2], %s975_s6 }
  0x36   : > { %1299 = dma.done.wait (%p1429_p4), %s332_s24, 256  }
  0x37   : > { %1301 = vsyncadd (%p1429_p4), %s332_s24, 4294967040  ;;  %s341_s26 = sand.u32 1, %s1420_s30   ;;  %s976_s14 = sshll.u32 %s1503_s16, 2 }
  0x38   : > { %s342_s21 = scalar_lea.sflag [#allocation6], %s341_s26  ;;  %s1517_s8 = scalar_lea.vmem [#allocation5], %s976_s14 }
  0x39   : > { %1303 = dma.done.wait (%p1429_p4), %s342_s21, 64  }
  0x3a   : > { %1305 = vsyncadd (%p1429_p4), %s342_s21, 4294967232 }
  0x3b   : > { %1307 = dma.done.wait (%p62_p1), [#allocation6], 6144  }
  0x3c   : > { %1309 = vsyncadd (%p62_p1), [#allocation6], 4294961152 }
  0x3d   : > { %1311 = dma.done.wait (%p62_p1), [#allocation9], 6144  }
  0x3e   : > { %1313 = vsyncadd (%p62_p1), [#allocation9], 4294961152  ;;  %v475_v0 = vld [vmem:[#allocation7 + $0x178] sm:$0xff]  ;;  %v474_v2 = vld [vmem:[#allocation7 + $0x170] sm:$0xff]  ;;  %vm399_vm0 = vcmask 1041408   ;;  %vm419_vm1 = vcmask 1045504  }
  0x3f   : > { %v443_v1 = vld [vmem:[#allocation7 + $0x78] sm:$0xff]  ;;  %532 = vmatpush.msra.mxu2 %v475_v0  ;;  %v442_v3 = vld [vmem:[#allocation7 + $0x70] sm:$0xff]  ;;  %v473_v5 = vld [vmem:[#allocation7 + $0x168] sm:$0xff]  ;;  %vm410_vm2 = vcmask 1046528   ;;  %s391_s15 = scalar_lea.vmem [#allocation10], %s975_s6  ;;  %s991_s11 = sshll.u32 %s1332_s27, 4 }
  0x40   : > { %480 = vmatpush.msra.mxu0 %v443_v1  ;;  %v459_v4 = vld [vmem:[#allocation7 + $0xf8] sm:$0xff]  ;;  %v441_v6 = vld [vmem:[#allocation7 + $0x68] sm:$0xff]  ;;  %v458_v7 = vld [vmem:[#allocation7 + $0xf0] sm:$0xff]  ;;  %s829_s2 = scalar_lea.hbm %s1684_s7, %s991_s11  ;;  %s830_s12 = sshll.u32 %s391_s15, 4  ;;  %s831_s12 = int_to_ptr.vmem [resolvable:$true] %s830_s12 }
  0x41   : > { %506 = vmatpush.msra.mxu1 %v459_v4  ;;  %533 = vmatpush.msra.mxu2 %v474_v2  ;;  %v457_v8 = vld [vmem:[#allocation7 + $0xe8] sm:$0xff]  ;;  %v472_v9 = vld [vmem:[#allocation7 + $0x160] sm:$0xff]  ;;  %v471_v12 = vld [vmem:[#allocation7 + $0x158] sm:$0xff]  ;;  %s832_s24 = sshll.u32 %s829_s2, 4  ;;  %s1266_s21 = scalar_lea.hbm %s1684_s7, 32  ;;  %s833_s24 = int_to_ptr.hbm [resolvable:$true] %s832_s24 }
  0x42   : > { %481 = vmatpush.msra.mxu0 %v442_v3  ;;  %v440_v10 = vld [vmem:[#allocation7 + $0x60] sm:$0xff]  ;;  %v439_v13 = vld [vmem:[#allocation7 + $0x58] sm:$0xff]  ;;  %v470_v15 = vld [vmem:[#allocation7 + $0x150] sm:$0xff]  ;;  %s1260_s26 = sshra.s32 %s833_s24, 4  ;;  %s1261_s26 = int_to_ptr.hbm [resolvable:$true] %s1260_s26 }
  0x43   : > { %507 = vmatpush.msra.mxu1 %v458_v7  ;;  %534 = vmatpush.msra.mxu2 %v473_v5  ;;  %v456_v11 = vld [vmem:[#allocation7 + $0xe0] sm:$0xff]  ;;  %v455_v14 = vld [vmem:[#allocation7 + $0xd8] sm:$0xff]  ;;  %v438_v16 = vld [vmem:[#allocation7 + $0x50] sm:$0xff]  ;;  %s1262_s6 = scalar_lea.hbm %s1261_s26, 16  ;;  %p1267_p10 = scmp.lt.s32.totalorder %s1261_s26, %s1684_s7 }
  0x44   : > { %482 = vmatpush.msra.mxu0 %v441_v6  ;;  %v454_v17 = vld [vmem:[#allocation7 + $0xd0] sm:$0xff]  ;;  %v469_v18 = vld [vmem:[#allocation7 + $0x148] sm:$0xff]  ;;  %v468_v21 = vld [vmem:[#allocation7 + $0x140] sm:$0xff]  ;;  %p1263_p1 = scmp.ne.s32.totalorder %s1261_s26, %s1262_s6  ;;  %p1268_p12 = scmp.lt.s32.totalorder %s1266_s21, %s1262_s6 }
  0x45   : > { %508 = vmatpush.msra.mxu1 %v457_v8  ;;  %535 = vmatpush.msra.mxu2 %v472_v9  ;;  %v437_v19 = vld [vmem:[#allocation7 + $0x48] sm:$0xff]  ;;  %v436_v22 = vld [vmem:[#allocation7 + $0x40] sm:$0xff]  ;;  %v467_v24 = vld [vmem:[#allocation7 + $0x138] sm:$0xff] }
  0x46   : > { %483 = vmatpush.msra.mxu0 %v440_v10  ;;  %v453_v20 = vld [vmem:[#allocation7 + $0xc8] sm:$0xff]  ;;  %v452_v23 = vld [vmem:[#allocation7 + $0xc0] sm:$0xff]  ;;  %v435_v25 = vld [vmem:[#allocation7 + $0x38] sm:$0xff]  ;;  %p1264_p4 = pnand %p1263_p1, %p1474_p7  ;;  %p1269_p13 = por %p1268_p12, %p1267_p10 }
  0x47   : > { %509 = vmatpush.msra.mxu1 %v456_v11  ;;  %536 = vmatpush.msra.mxu2 %v471_v12  ;;  %v451_v26 = vld [vmem:[#allocation7 + $0xb8] sm:$0xff]  ;;  %v395_v28 = vld [vmem:[%s1509_s10 + $0x8] sm:$0xff]  ;;  %v465_v32 = vld [vmem:[#allocation7 + $0x128] sm:$0xff] }
  0x48   : > { %484 = vmatpush.msra.mxu0 %v439_v13  ;;  %v394_v27 = vld [vmem:[%s1509_s10] sm:$0xff]  ;;  %v466_v29 = vld [vmem:[#allocation7 + $0x130] sm:$0xff]  ;;  %v401_v35 = vrot.slane %v395_v28, 6  ;;  %v464_v38 = vld [vmem:[#allocation7 + $0x120] sm:$0xff]  ;;  %s816_s10 = scalar_lea.sflag [#allocation4], %s1503_s16  ;;  %p1265_p8 = pneg %p1264_p4 }
  0x49   : > { %510 = vmatpush.msra.mxu1 %v455_v14  ;;  %537 = vmatpush.msra.mxu2 %v470_v15  ;;  %v434_v30 = vld [vmem:[#allocation7 + $0x30] sm:$0xff]  ;;  %v433_v33 = vld [vmem:[#allocation7 + $0x28] sm:$0xff]  ;;  %v400_v34 = vrot.slane %v394_v27, 6  ;;  %v396_v37 = vld [vmem:[%s1517_s8] sm:$0xf] }
  0x4a   : > { %485 = vmatpush.msra.mxu0 %v438_v16  ;;  %v450_v31 = vld [vmem:[#allocation7 + $0xb0] sm:$0xff]  ;;  %v449_v36 = vld [vmem:[#allocation7 + $0xa8] sm:$0xff]  ;;  %v432_v39 = vld [vmem:[#allocation7 + $0x20] sm:$0xff]  ;;  %v407_v60 = vsel %vm399_vm0, %v401_v35, %v396_v37  ;;  %p1270_p0 = pnand %p1269_p13, %p1265_p8 }
  0x4b   : > { %511 = vmatpush.msra.mxu1 %v454_v17  ;;  %538 = vmatpush.msra.mxu2 %v469_v18  ;;  %v448_v40 = vld [vmem:[#allocation7 + $0xa0] sm:$0xff]  ;;  %v463_v41 = vld [vmem:[#allocation7 + $0x118] sm:$0xff]  ;;  %v402_v43 = vsel %vm399_vm0, %v400_v34, %v401_v35  ;;  %v406_v44 = vsel %vm399_vm0, %v396_v37, %v400_v34  ;;  %v462_v46 = vld [vmem:[#allocation7 + $0x110] sm:$0xff]  ;;  %v423_v62 = vrot.slane %v407_v60, 2  ;;  %v414_v63 = vrot.slane %v407_v60, 1 }
  0x4c   : > { %486 = vmatpush.msra.mxu0 %v437_v19  ;;  %v431_v42 = vld [vmem:[#allocation7 + $0x18] sm:$0xff]  ;;  %v430_v47 = vld [vmem:[#allocation7 + $0x10] sm:$0xff]  ;;  %v420_v49 = vrot.slane %v406_v44, 2  ;;  %v421_v50 = vrot.slane %v402_v43, 2  ;;  %v461_v51 = vld [vmem:[#allocation7 + $0x108] sm:$0xff]  ;;  %v411_v54 = vrot.slane %v406_v44, 1 }
  0x4d   : > { %512 = vmatpush.msra.mxu1 %v453_v20  ;;  %539 = vmatpush.msra.mxu2 %v468_v21  ;;  %v447_v45 = vld [vmem:[#allocation7 + $0x98] sm:$0xff]  ;;  %v446_v48 = vld [vmem:[#allocation7 + $0x90] sm:$0xff]  ;;  %v429_v52 = vld [vmem:[#allocation7 + $0x8] sm:$0xff]  ;;  %v412_v55 = vrot.slane %v402_v43, 1 }
  0x4e   : > { %487 = vmatpush.msra.mxu0 %v436_v22  ;;  %v445_v53 = vld [vmem:[#allocation7 + $0x88] sm:$0xff]  ;;  %v460_v56 = vld [vmem:[#allocation7 + $0x100] sm:$0xff]  ;;  %v422_v58 = vsel %vm419_vm1, %v420_v49, %v421_v50  ;;  %v424_v0 = vsel %vm419_vm1, %v421_v50, %v423_v62  ;;  %v1117_v2 = vld [vmem:[%s1680_s3] ss:$0 sm:$0xff] }
  0x4f   : > { %513 = vmatpush.msra.mxu1 %v452_v23  ;;  %540 = vmatpush.msra.mxu2 %v467_v24  ;;  %v428_v57 = vld [vmem:[#allocation7] sm:$0xff]  ;;  %v413_v61 = vsel %vm410_vm2, %v411_v54, %v412_v55  ;;  %v415_v1 = vsel %vm410_vm2, %v412_v55, %v414_v63  ;;  %v706_v27 = vld [vmem:[#allocation8 + $0xf0] sm:$0xff]  ;;  %v1545_v28 = vld [vmem:[#allocation8 + $0x78] sm:$0xff] }
  0x50   : > { %488 = vmatpush.msra.mxu0 %v435_v25  ;;  %v444_v59 = vld [vmem:[#allocation7 + $0x80] sm:$0xff]  ;;  %v574_v25 = vlaneseq  ;;  %v1565_v49 = vld [vmem:[#allocation8 + $0x68] sm:$0xff]  ;;  %v703_v50 = vld [vmem:[#allocation8 + $0xd8] sm:$0xff] }
  0x51   : > { %514 = vmatpush.msra.mxu1 %v451_v26  ;;  %541 = vmatpush.msra.mxu2 %v466_v29  ;;  %v707_v26 = vld [vmem:[#allocation8 + $0xf8] sm:$0xff]  ;;  %v701_v55 = vld [vmem:[#allocation8 + $0xc8] sm:$0xff] }
  0x52   : > { %489 = vmatpush.msra.mxu0 %v434_v30  ;;  %718 = vmatpush.msra.mxu3 %v707_v26  ;;  %v575_v29 = vand.u32 127, %v574_v25  ;;  %v780_v54 = vld [vmem:[#allocation8 + $0x178] sm:$0xff] }
  0x53   : > { %515 = vmatpush.msra.mxu1 %v450_v31  ;;  %542 = vmatpush.msra.mxu2 %v465_v32 }
  0x54   : > { %490 = vmatpush.msra.mxu0 %v433_v33  ;;  %719 = vmatpush.msra.mxu3 %v706_v27  ;;  %vm576_vm3 = vcmp.lt.s32.totalorder %v575_v29, 32  ;;  %v767_v27 = vld [vmem:[#allocation8 + $0x110] sm:$0xff]  ;;  %v766_v29 = vld [vmem:[#allocation8 + $0x108] sm:$0xff] }
  0x55   : > { %516 = vmatpush.msra.mxu1 %v449_v36  ;;  %543 = vmatpush.msra.mxu2 %v464_v38 }
  0x56   : > { %491 = vmatpush.msra.mxu0 %v432_v39 }
  0x57   : > { %517 = vmatpush.msra.mxu1 %v448_v40  ;;  %544 = vmatpush.msra.mxu2 %v463_v41 }
  0x58   : > { %492 = vmatpush.msra.mxu0 %v431_v42 }
  0x59   : > { %518 = vmatpush.msra.mxu1 %v447_v45  ;;  %545 = vmatpush.msra.mxu2 %v462_v46  ;;  %v705_v46 = vld [vmem:[#allocation8 + $0xe8] sm:$0xff] }
  0x5a   : > { %493 = vmatpush.msra.mxu0 %v430_v47  ;;  %v1562_v47 = vld [vmem:[#allocation8 + $0x70] sm:$0xff]  ;;  %720 = vmatpush.msra.mxu3 %v705_v46 }
  0x5b   : > { %519 = vmatpush.msra.mxu1 %v446_v48  ;;  %546 = vmatpush.msra.mxu2 %v461_v51  ;;  %v704_v48 = vld [vmem:[#allocation8 + $0xe0] sm:$0xff] }
  0x5c   : > { %494 = vmatpush.msra.mxu0 %v429_v52  ;;  %721 = vmatpush.msra.mxu3 %v704_v48  ;;  %v1568_v51 = vld [vmem:[#allocation8 + $0x60] sm:$0xff]  ;;  %v702_v52 = vld [vmem:[#allocation8 + $0xd0] sm:$0xff] }
  0x5d   : > { %520 = vmatpush.msra.mxu1 %v445_v53  ;;  %547 = vmatpush.msra.mxu2 %v460_v56  ;;  %v1571_v53 = vld [vmem:[#allocation8 + $0x58] sm:$0xff]  ;;  %v1574_v56 = vld [vmem:[#allocation8 + $0x50] sm:$0xff] }
  0x5e   : > { %495 = vmatpush.msra.mxu0 %v428_v57  ;;  %548 = vmatmul.f32.vlgmr.msra.gmra.mxu2 %v422_v58  ;;  %v779_v57 = vld [vmem:[#allocation8 + $0x170] sm:$0xff]  ;;  %v700_v58 = vld [vmem:[#allocation8 + $0xc0] sm:$0xff] }
  0x5f   : > { %496 = vmatmul.f32.vlgmr.msra.gmra.mxu0 %v406_v44  ;;  %521 = vmatpush.msra.mxu1 %v444_v59  ;;  %v1577_v59 = vld [vmem:[#allocation8 + $0x48] sm:$0xff] }
  0x60   : > { %522 = vmatmul.f32.vlgmr.msra.gmra.mxu1 %v413_v61  ;;  %741 = vmatpush.msrb.mxu0 %v1545_v28  ;;  %v699_v61 = vld [vmem:[#allocation8 + $0xb8] sm:$0xff] }
  0x61   : > { %722 = vmatpush.msra.mxu3 %v703_v50  ;;  %788 = vmatpush.msrb.mxu1 %v780_v54 }
  0x62   : > { %742 = vmatpush.msrb.mxu0 %v1562_v47  ;;  %1008 = vmatpush.msrb.mxu2 %v780_v54 }
  0x63   : > { %723 = vmatpush.msra.mxu3 %v702_v52  ;;  %789 = vmatpush.msrb.mxu1 %v779_v57 }
  0x64   : > { %743 = vmatpush.msrb.mxu0 %v1565_v49  ;;  %1009 = vmatpush.msrb.mxu2 %v779_v57  ;;  %v1346_v57 = vmov 0.0  }
  0x65   : > { %724 = vmatpush.msra.mxu3 %v701_v55 }
  0x66   : > { %551 = vmatmul.f32.gmra.mxu2 %v424_v0  ;;  %744 = vmatpush.msrb.mxu0 %v1568_v51  ;;  %v698_v0 = vld [vmem:[#allocation8 + $0xb0] sm:$0xff] }
  0x67   : > { %499 = vmatmul.f32.gmra.mxu0 %v402_v43  ;;  %725 = vmatpush.msra.mxu3 %v700_v58 }
  0x68   : > { %525 = vmatmul.f32.gmra.mxu1 %v415_v1  ;;  %745 = vmatpush.msrb.mxu0 %v1571_v53  ;;  %v1583_v1 = vld [vmem:[#allocation8 + $0x38] sm:$0xff] }
  0x69   : > { %726 = vmatpush.msra.mxu3 %v699_v61 }
  0x6a   : > { %746 = vmatpush.msrb.mxu0 %v1574_v56 }
  0x6b   : > { %727 = vmatpush.msra.mxu3 %v698_v0 }
  0x6c   : > { %747 = vmatpush.msrb.mxu0 %v1577_v59 }
  0x6e   : > { %554 = vmatmul.f32.gmra.mxu2 %v423_v62  ;;  %v1580_v62 = vld [vmem:[#allocation8 + $0x40] sm:$0xff] }
  0x6f   : > { %502 = vmatmul.f32.gmra.mxu0 %v407_v60  ;;  %v778_v60 = vld [vmem:[#allocation8 + $0x168] sm:$0xff] }
  0x70   : > { %528 = vmatmul.f32.gmra.mxu1 %v414_v63  ;;  %1010 = vmatpush.msrb.mxu2 %v778_v60  ;;  %v777_v63 = vld [vmem:[#allocation8 + $0x160] sm:$0xff] }
  0x71   : > { %790 = vmatpush.msrb.mxu1 %v778_v60  ;;  %748 = vmatpush.msrb.mxu0 %v1580_v62 }
  0x72   : > { %1011 = vmatpush.msrb.mxu2 %v777_v63 }
  0x73   : > { %791 = vmatpush.msrb.mxu1 %v777_v63  ;;  %749 = vmatpush.msrb.mxu0 %v1583_v1 }
  0xdc   : > { %v497_v3 = vpop.f32.mrf.mxu0 }
  0xdd   : > { %v498_v4 = vadd.f32 %v1117_v2, %v497_v3  ;;  %v523_v5 = vpop.f32.mrf.mxu1  ;;  %v697_v3 = vld [vmem:[#allocation8 + $0xa8] sm:$0xff] }
  0xde   : > { %728 = vmatpush.msra.mxu3 %v697_v3 }
  0xdf   : > { %v524_v6 = vadd.f32 %v523_v5, %v498_v4  ;;  %v1586_v4 = vld [vmem:[#allocation8 + $0x30] sm:$0xff] }
  0xe0   : > { %750 = vmatpush.msrb.mxu0 %v1586_v4  ;;  %v775_v5 = vld [vmem:[#allocation8 + $0x150] sm:$0xff] }
  0xe1   : > { %v549_v7 = vpop.f32.mrf.mxu2 }
  0xe2   : > { %v550_v8 = vadd.f32 %v549_v7, %v524_v6  ;;  %v696_v6 = vld [vmem:[#allocation8 + $0xa0] sm:$0xff]  ;;  %v1589_v7 = vld [vmem:[#allocation8 + $0x28] sm:$0xff] }
  0xe3   : > { %729 = vmatpush.msra.mxu3 %v696_v6  ;;  %751 = vmatpush.msrb.mxu0 %v1589_v7 }
  0xe4   : > { %v500_v9 = vpop.f32.mrf.mxu0  ;;  %v558_v10 = vmax.f32 %v550_v8, 0.0  ;;  %v774_v8 = vld [vmem:[#allocation8 + $0x148] sm:$0xff] }
  0xe5   : > { %v501_v11 = vadd.f32 %v1117_v2, %v500_v9  ;;  %v526_v12 = vpop.f32.mrf.mxu1  ;;  %v695_v9 = vld [vmem:[#allocation8 + $0x98] sm:$0xff] }
  0xe6   : > { %561 = vadd.xlane.f32.xlu0 %v558_v10  ;;  %730 = vmatpush.msra.mxu3 %v695_v9 }
  0xe7   : > { %v527_v13 = vadd.f32 %v526_v12, %v501_v11  ;;  %v773_v11 = vld [vmem:[#allocation8 + $0x140] sm:$0xff]  ;;  %v694_v12 = vld [vmem:[#allocation8 + $0x90] sm:$0xff] }
  0xe8   : > { %731 = vmatpush.msra.mxu3 %v694_v12 }
  0xe9   : > { %v552_v14 = vpop.f32.mrf.mxu2 }
  0xea   : > { %v553_v15 = vadd.f32 %v552_v14, %v527_v13  ;;  %v1595_v13 = vld [vmem:[#allocation8 + $0x18] sm:$0xff] }
  0xeb   : > { %v772_v14 = vld [vmem:[#allocation8 + $0x138] sm:$0xff] }
  0xec   : > { %v503_v16 = vpop.f32.mrf.mxu0  ;;  %v559_v17 = vmax.f32 %v553_v15, 0.0  ;;  %v693_v15 = vld [vmem:[#allocation8 + $0x88] sm:$0xff] }
  0xed   : > { %v504_v18 = vadd.f32 %v1117_v2, %v503_v16  ;;  %v529_v19 = vpop.f32.mrf.mxu1  ;;  %v776_v2 = vld [vmem:[#allocation8 + $0x158] sm:$0xff]  ;;  %v1598_v16 = vld [vmem:[#allocation8 + $0x10] sm:$0xff]  ;;  %732 = vmatpush.msra.mxu3 %v693_v15 }
  0xee   : > { %563 = vadd.xlane.f32.xlu0 %v559_v17  ;;  %792 = vmatpush.msrb.mxu1 %v776_v2 }
  0xef   : > { %v530_v20 = vadd.f32 %v529_v19, %v504_v18  ;;  %1012 = vmatpush.msrb.mxu2 %v776_v2  ;;  %v692_v18 = vld [vmem:[#allocation8 + $0x80] sm:$0xff]  ;;  %v1601_v19 = vld [vmem:[#allocation8 + $0x8] sm:$0xff] }
  0xf0   : > { %793 = vmatpush.msrb.mxu1 %v775_v5  ;;  %733 = vmatpush.msra.mxu3 %v692_v18 }
  0xf1   : > { %v555_v21 = vpop.f32.mrf.mxu2  ;;  %1013 = vmatpush.msrb.mxu2 %v775_v5 }
  0xf2   : > { %v556_v22 = vadd.f32 %v555_v21, %v530_v20  ;;  %794 = vmatpush.msrb.mxu1 %v774_v8  ;;  %v770_v20 = vld [vmem:[#allocation8 + $0x128] sm:$0xff]  ;;  %992 = vmatpush.msrb.mxu3 %v1545_v28  ;;  %v1605_v21 = vld [vmem:[#allocation8] sm:$0xff] }
  0xf3   : > { %1014 = vmatpush.msrb.mxu2 %v774_v8 }
  0xf4   : > { %v560_v23 = vmax.f32 %v556_v22, 0.0  ;;  %795 = vmatpush.msrb.mxu1 %v773_v11  ;;  %v769_v22 = vld [vmem:[#allocation8 + $0x120] sm:$0xff]  ;;  %993 = vmatpush.msrb.mxu3 %v1562_v47 }
  0xf5   : > { %1015 = vmatpush.msrb.mxu2 %v773_v11 }
  0xf6   : > { %v565_v24 = vsel %vm399_vm0, %v560_v23, 0.0  ;;  %796 = vmatpush.msrb.mxu1 %v772_v14  ;;  %994 = vmatpush.msrb.mxu3 %v1565_v49 }
  0xf7   : > { %566 = vadd.xlane.f32.xlu1 %v565_v24  ;;  %1016 = vmatpush.msrb.mxu2 %v772_v14  ;;  %v768_v24 = vld [vmem:[#allocation8 + $0x118] sm:$0xff] }
  0xf8   : > { %995 = vmatpush.msrb.mxu3 %v1568_v51 }
  0xfa   : > { %996 = vmatpush.msrb.mxu3 %v1571_v53  ;;  %v1119_v53 = vld [vmem:[%s1682_s5] ss:$0 sm:$0xff] }
  0xfc   : > { %997 = vmatpush.msrb.mxu3 %v1574_v56 }
  0xfe   : > { %998 = vmatpush.msrb.mxu3 %v1577_v59 }
 0x100   : > { %999 = vmatpush.msrb.mxu3 %v1580_v62 }
 0x102   : > { %1000 = vmatpush.msrb.mxu3 %v1583_v1 }
 0x104   : > { %1001 = vmatpush.msrb.mxu3 %v1586_v4 }
 0x106   : > { %1002 = vmatpush.msrb.mxu3 %v1589_v7 }
 0x159   : > { %v562_v30 = vpop.xlane.xlu0 %561 }
 0x15a   : > { %v568_v31 = vmul.f32 0.03125, %v562_v30  ;;  %v765_v30 = vld [vmem:[#allocation8 + $0x100] sm:$0xff] }
 0x15c   : > { %v571_v32 = vsub.f32 %v558_v10, %v568_v31  ;;  %v1592_v10 = vld [vmem:[#allocation8 + $0x20] sm:$0xff] }
 0x15d   : > { %752 = vmatpush.msrb.mxu0 %v1592_v10  ;;  %1003 = vmatpush.msrb.mxu3 %v1592_v10 }
 0x15e   : > { %v1549_v33 = vsel %vm576_vm3, %v571_v32, 0.0 }
 0x15f   : > { %v582_v34 = vmul.f32 %v1549_v33, %v1549_v33  ;;  %753 = vmatpush.msrb.mxu0 %v1595_v13  ;;  %1004 = vmatpush.msrb.mxu3 %v1595_v13 }
 0x161   : > { %585 = vadd.xlane.f32.xlu1 %v582_v34  ;;  %v564_v35 = vpop.xlane.xlu0 %563  ;;  %754 = vmatpush.msrb.mxu0 %v1598_v16 }
 0x162   : > { %v569_v36 = vmul.f32 0.03125, %v564_v35  ;;  %1005 = vmatpush.msrb.mxu3 %v1598_v16 }
 0x163   : > { %755 = vmatpush.msrb.mxu0 %v1601_v19 }
 0x164   : > { %v572_v37 = vsub.f32 %v559_v17, %v569_v36  ;;  %v771_v17 = vld [vmem:[#allocation8 + $0x130] sm:$0xff]  ;;  %1006 = vmatpush.msrb.mxu3 %v1601_v19 }
 0x165   : > { %797 = vmatpush.msrb.mxu1 %v771_v17  ;;  %1017 = vmatpush.msrb.mxu2 %v771_v17 }
 0x166   : > { %v1553_v38 = vsel %vm576_vm3, %v572_v37, 0.0  ;;  %756 = vmatpush.msrb.mxu0 %v1605_v21  ;;  %1007 = vmatpush.msrb.mxu3 %v1605_v21 }
 0x167   : > { %v583_v39 = vmul.f32 %v1553_v38, %v1553_v38  ;;  %798 = vmatpush.msrb.mxu1 %v770_v20  ;;  %1018 = vmatpush.msrb.mxu2 %v770_v20 }
 0x169   : > { %587 = vadd.xlane.f32.xlu2 %v583_v39  ;;  %799 = vmatpush.msrb.mxu1 %v769_v22  ;;  %v646_v39 = vshrl.u32 %v574_v25, 7  ;;  %v1118_v25 = vld [vmem:[%s1681_s4] ss:$0 sm:$0xff] }
 0x16a   : > { %v567_v40 = vpop.xlane.xlu1 %566  ;;  %1019 = vmatpush.msrb.mxu2 %v769_v22 }
 0x16b   : > { %v570_v41 = vmul.f32 0.03125, %v567_v40  ;;  %800 = vmatpush.msrb.mxu1 %v768_v24  ;;  %v980_v46 = vadd.s32 4294967295, %v646_v39  ;;  %v648_v2 = vadd.s32 16, %v646_v39 }
 0x16c   : > { %1020 = vmatpush.msrb.mxu2 %v768_v24 }
 0x16d   : > { %v573_v42 = vsub.f32 %v560_v23, %v570_v41  ;;  %801 = vmatpush.msrb.mxu1 %v767_v27  ;;  %vm657_vm7 = vcmp.ge.s32.totalorder %v980_v46, 0  ;;  %v982_v7 = vadd.s32 4294967295, %v648_v2 }
 0x16e   : > { %1021 = vmatpush.msrb.mxu2 %v767_v27  ;;  %v983_v58 = vsel %vm657_vm7, 1.0, %v1346_v57 }
 0x16f   : > { %v1557_v43 = vsel %vm576_vm3, %v573_v42, 0.0  ;;  %802 = vmatpush.msrb.mxu1 %v766_v29  ;;  %vm662_vm14 = vcmp.lt.s32.totalorder %v982_v7, 16 }
 0x170   : > { %v584_v44 = vmul.f32 %v1557_v43, %v1557_v43  ;;  %1022 = vmatpush.msrb.mxu2 %v766_v29  ;;  %v984_v17 = vsel %vm662_vm14, 1.0, %v1346_v57 }
 0x171   : > { %803 = vmatpush.msrb.mxu1 %v765_v30 }
 0x172   : > { %v589_v45 = vsel %vm399_vm0, %v584_v44, 0.0  ;;  %1023 = vmatpush.msrb.mxu2 %v765_v30 }
 0x173   : > { %590 = vadd.xlane.f32.xlu2 %v589_v45 }
 0x1d4   : > { %v586_v23 = vpop.xlane.xlu1 %585 }
 0x1d5   : > { %v592_v26 = vmul.f32 0.03125, %v586_v23 }
 0x1d7   : > { %v595_v28 = vadd.f32 1e-05, %v592_v26 }
 0x1d9   : > { %1120 = vrsqrt.f32 %v595_v28  ;;  %vm604_vm5 = vweird.f32 %v595_v28 }
 0x1dc   : > { %v588_v31 = vpop.xlane.xlu2 %587 }
 0x1dd   : > { %v593_v32 = vmul.f32 0.03125, %v588_v31 }
 0x1df   : > { %v1121_v34 = vpop.eup %1120  ;;  %v596_v35 = vadd.f32 1e-05, %v593_v32 }
 0x1e0   : > { %v599_v36 = vmul.f32 %v1121_v34, %v595_v28  ;;  %vm605_vm4 = vweird.f32 %v1121_v34 }
 0x1e1   : > { %1122 = vrsqrt.f32 %v596_v35  ;;  %vm606_vm6 = vmor %vm604_vm5, %vm605_vm4  ;;  %vm614_vm9 = vweird.f32 %v596_v35 }
 0x1e2   : > { %v600_v37 = vmul.f32 %v1121_v34, %v599_v36 }
 0x1e4   : > { %v601_v40 = vmul.f32 0.5, %v600_v37 }
 0x1e6   : > { %v602_v41 = vsub.f32 1.5, %v601_v40  ;;  %v591_v42 = vpop.xlane.xlu2 %590 }
 0x1e7   : > { %v1123_v44 = vpop.eup %1122  ;;  %v594_v45 = vmul.f32 0.03125, %v591_v42 }
 0x1e8   : > { %v603_v47 = vmul.f32 %v1121_v34, %v602_v41  ;;  %v609_v48 = vmul.f32 %v1123_v44, %v596_v35  ;;  %vm615_vm8 = vweird.f32 %v1123_v44 }
 0x1e9   : > { %v597_v49 = vadd.f32 1e-05, %v594_v45  ;;  %vm616_vm10 = vmor %vm614_vm9, %vm615_vm8 }
 0x1ea   : > { %v607_v50 = vsel %vm606_vm6, %v1121_v34, %v603_v47  ;;  %v610_v51 = vmul.f32 %v1123_v44, %v609_v48 }
 0x1eb   : > { %v628_v52 = vmul.f32 %v607_v50, %v1549_v33  ;;  %1124 = vrsqrt.f32 %v597_v49  ;;  %vm624_vm12 = vweird.f32 %v597_v49 }
 0x1ec   : > { %v611_v54 = vmul.f32 0.5, %v610_v51 }
 0x1ed   : > { %v635_v55 = vmul.f32 %v1118_v25, %v628_v52 }
 0x1ee   : > { %v612_v56 = vsub.f32 1.5, %v611_v54 }
 0x1ef   : > { %v642_v59 = vadd.f32 %v1119_v53, %v635_v55 }
 0x1f0   : > { %v613_v33 = vmul.f32 %v1123_v44, %v612_v56 }
 0x1f1   : > { %v1125_v60 = vpop.eup %1124  ;;  %v672_v61 = vmul.f32 %v983_v58, %v642_v59 }
 0x1f2   : > { %v617_v62 = vsel %vm616_vm10, %v1123_v44, %v613_v33  ;;  %v619_v63 = vmul.f32 %v1125_v60, %v597_v49  ;;  %vm625_vm11 = vweird.f32 %v1125_v60 }
 0x1f3   : > { %v629_v0 = vmul.f32 %v617_v62, %v1553_v38  ;;  %757 = vmatmul.f32.vlgmr.msrb.gmra.mxu0 %v672_v61  ;;  %v711_v8 = vrot.slane %v672_v61, 1  ;;  %v781_v10 = vrot.slane %v672_v61, 2  ;;  %vm626_vm13 = vmor %vm624_vm12, %vm625_vm11 }
 0x1f4   : > { %v620_v1 = vmul.f32 %v1125_v60, %v619_v63 }
 0x1f5   : > { %v636_v3 = vmul.f32 %v1118_v25, %v629_v0 }
 0x1f6   : > { %v621_v4 = vmul.f32 0.5, %v620_v1 }
 0x1f7   : > { %v643_v5 = vadd.f32 %v1119_v53, %v636_v3 }
 0x1f8   : > { %v622_v6 = vsub.f32 1.5, %v621_v4 }
 0x1f9   : > { %v712_v9 = vrot.slane %v643_v5, 1  ;;  %v782_v11 = vrot.slane %v643_v5, 2 }
 0x1fa   : > { %v623_v12 = vmul.f32 %v1125_v60, %v622_v6 }
 0x1fb   : > { %v713_v13 = vsel %vm410_vm2, %v711_v8, %v712_v9  ;;  %v783_v38 = vsel %vm419_vm1, %v781_v10, %v782_v11 }
 0x1fc   : > { %v627_v14 = vsel %vm626_vm13, %v1125_v60, %v623_v12  ;;  %734 = vmatmul.f32.vlgmr.msra.gmra.mxu3 %v713_v13  ;;  %804 = vmatmul.f32.vlgmr.msrb.gmra.mxu1 %v783_v38 }
 0x1fd   : > { %v630_v15 = vmul.f32 %v627_v14, %v1557_v43 }
 0x1ff   : > { %v637_v16 = vmul.f32 %v1118_v25, %v630_v15 }
 0x201   : > { %v644_v18 = vadd.f32 %v1119_v53, %v637_v16 }
 0x203   : > { %v674_v19 = vmul.f32 %v984_v17, %v644_v18 }
 0x205   : > { %v714_v20 = vrot.slane %v674_v19, 1  ;;  %v784_v21 = vrot.slane %v674_v19, 2 }
 0x207   : > { %v715_v22 = vsel %vm410_vm2, %v712_v9, %v714_v20  ;;  %v785_v23 = vsel %vm419_vm1, %v782_v11, %v784_v21 }
 0x208   : > { %737 = vmatmul.f32.gmra.mxu3 %v715_v22  ;;  %807 = vmatmul.f32.vlgmr.msrb.gmra.mxu2 %v785_v23 }
 0x210   : > { %760 = vmatmul.f32.vlgmr.msrb.gmra.mxu3 %v643_v5 }
 0x270   : > { %v758_v24 = vpop.f32.mrf.mxu0 }
 0x279   : > { %v805_v43 = vpop.f32.mrf.mxu1 }
 0x27f   : > { %v735_v26 = vpop.f32.mrf.mxu3 }
 0x280   : > { %v759_v27 = vadd.f32 %v758_v24, %v735_v26 }
 0x282   : > { %v811_v28 = vadd.f32 %v805_v43, %v759_v27 }
 0x284   : > { %813 = vst [vmem:[%s391_s15] sm:$0xff] %v811_v28 }
 0x28b   : > { %v738_v29 = vpop.f32.mrf.mxu3  ;;  %v808_v32 = vpop.f32.mrf.mxu2 }
 0x293   : > { %v761_v30 = vpop.f32.mrf.mxu3 }
 0x294   : > { %v762_v31 = vadd.f32 %v761_v30, %v738_v29 }
 0x296   : > { %v812_v34 = vadd.f32 %v808_v32, %v762_v31 }
 0x298   : > { %814 = vst [vmem:[%s391_s15 + $0x8] sm:$0xff] %v812_v34 }
 0x299   : > { %1273 = shalt.err (!%p1270_p0)
}
 0x29a   : > { %s1347_s16 = smov 128   ;;  %s1348_s9 = smov 8  }
 0x29b   : > { %1036 = dma.vmem_to_hbm [thread:$0]  (%p1474_p7), %s831_s12, 256, %s833_s24, %s816_s10, %s1347_s16, %s1347_s16, %s1348_s9  }
 0x29c PF: > { %s1711_s13 = sld [smem:[#allocation16_spill]]  ;;  %p1053_p3 = pnand %p968_p11, %p1434_p6 }
 0x29e   : > { %p1054_p5 = pneg %p1053_p3 }
 0x2a2   : > { %s847_s19 = sand.u32 1, %s1711_s13  }
 0x2a3   : > { %s848_s23 = scalar_lea.sflag [#allocation4], %s847_s19 }
 0x2a4   : > { %1315 = dma.done.wait (%p1054_p5), %s848_s23, 256  }
 0x2a5   : > { %1317 = vsyncadd (%p1054_p5), %s848_s23, 4294967040  ;;  %s27_s29 = sadd.s32 1, %s1340_s29   ;;  %s1713_s15 = sld [smem:[#allocation17_spill]] }
 0x2a6   : > { %p24_p9 = scmp.ge.s32.totalorder %s27_s29, 4   ;;  %s1714_s26 = sld [smem:[#allocation21_spill]] }
 0x2a7   : > { %s1715_s11 = sld [smem:[#allocation19_spill]]  ;;  %s1716_s24 = smov %s1324_s25 }
 0x2a8   : > { %s1718_s27 = smov %s1336_s28 }
 0x2a9   :  { %26 = sbr.rel (!%p24_p9) target bundleno = 12 (0xc), region = 116 }
 0x2ab   : > { %s1717_s25 = smov %s1713_s15 }
 0x2ad   : > { %s1719_s28 = smov %s1715_s11 }
 0x2ae   :  { %854 = vsyncpa [#allocation3], 1 }
 0x2af   :  { %856 = vsyncpa [#allocation3 + $0x1], 1 }
 0x2b0   :  { %857 = vsyncpa [#allocation6], 1 }
 0x2b1   :  { %859 = vsyncpa [#allocation6 + $0x1], 1 }
 0x2b2   :  { %860 = vsyncpa [#allocation9], 1 }
 0x2b3   :  { %861 = vsyncpa [#allocation4], 1 }
 0x2b4   :  { %863 = vsyncpa [#allocation4 + $0x1], 1 }

</bundles_post_ra>
